<compile_context>
chip_gen: v7x
topology: tpu7x:2x2x1
jax: 0.10.0
libtpu: 0.0.40
codegen_flags: <defaults>
</compile_context>

<pallas_src>
import functools

import jax
import jax.numpy as jnp
from jax import lax
from jax.experimental import pallas as pl
from jax.experimental.pallas import tpu as pltpu


# ----------------------------------------------------------------------------
# Single fused kernel: input projection + bidirectional recurrence + Linear.
# ----------------------------------------------------------------------------
def _bilstm_kernel(x_ref, wih_ref, whhf_ref, whhb_ref, b_ref,
                   wembf_ref, wembb_ref, bemb_ref,
                   out_ref,
                   xproj,
                   *, T, Bp, H):
    G = 4 * H

    # (1) Input projection for ALL timesteps, both directions, in one matmul
    #     with the time-invariant gate bias folded in (off the serial path):
    #     (T*Bp, nIn) @ (nIn, 8H) + (1, 8H) -> (T*Bp, 8H).
    xproj[...] = (jnp.dot(x_ref[...], wih_ref[...],
                          preferred_element_type=jnp.float32)
                  + b_ref[...])

    whh_f = whhf_ref[...]                     # (H, 4H), loaded once
    whh_b = whhb_ref[...]                     # (H, 4H), loaded once

    h_f = jnp.zeros((Bp, H), jnp.float32)
    h_b = jnp.zeros((Bp, H), jnp.float32)
    c_f = jnp.zeros((Bp, H), jnp.float32)
    c_b = jnp.zeros((Bp, H), jnp.float32)

    def cell(gates, c_prev):
        # Gate columns were permuted in the wrapper to (i, f, o, g):
        # one EUP sigmoid launch over a contiguous (Bp, 3H) slice + one tanh.
        ifo = jax.nn.sigmoid(gates[:, :3 * H])
        g = jnp.tanh(gates[:, 3 * H:])
        i = ifo[:, :H]
        f = ifo[:, H:2 * H]
        o = ifo[:, 2 * H:]
        c_new = f * c_prev + i * g
        h_new = o * jnp.tanh(c_new)
        return h_new, c_new

    # (2) Recurrence: T is small & static -> fully unrolled (all offsets static,
    #     full LLO visibility).  No lane concatenates on the dependent chain.
    hf_list = []
    hb_list = []
    for t in range(T):
        gates_f = (jnp.dot(h_f, whh_f, preferred_element_type=jnp.float32)
                   + xproj[pl.ds(t * Bp, Bp), pl.ds(0, G)])
        gates_b = (jnp.dot(h_b, whh_b, preferred_element_type=jnp.float32)
                   + xproj[pl.ds((T - 1 - t) * Bp, Bp), pl.ds(G, G)])
        h_f, c_f = cell(gates_f, c_f)
        h_b, c_b = cell(gates_b, c_b)
        hf_list.append(h_f)
        hb_list.append(h_b)

    # (3) T*Bp*H f32 is only a few KiB: keep hidden outputs as values (no VMEM
    #     slab round-trip).  Backward list is reversed into output time order.
    rec_f = jnp.concatenate(hf_list, axis=0)            # (T*Bp, H)
    rec_b = jnp.concatenate(hb_list[::-1], axis=0)      # (T*Bp, H)

    # (4) Fused embedding Linear over the whole sequence, split per direction
    #     so the two slabs never need a lane concatenate.  Output is lane-dense
    #     (nOut padded to 128 in the wrapper).
    out_ref[...] = (
        jnp.dot(rec_f, wembf_ref[...], preferred_element_type=jnp.float32)
        + jnp.dot(rec_b, wembb_ref[...], preferred_element_type=jnp.float32)
        + bemb_ref[...])


# ----------------------------------------------------------------------------
# Wrapper: layout prep (gate permutation, batch/lane padding) + one pallas_call.
# ----------------------------------------------------------------------------
@jax.jit
def bidirectional_lstm_forward(x, params):
    T, B, nIn = x.shape
    H = params["whh_f"].shape[0]
    nOut = params["w_emb"].shape[1]
    G = 4 * H

    # Pad batch to a sublane multiple (8): whole-tile per-step accesses.
    Bp = max(8, ((B + 7) // 8) * 8)
    # Pad nOut to a lane multiple (128): lane-dense output stores / writeback.
    nOutP = max(128, ((nOut + 127) // 128) * 128)

    # Permute gate columns from torch order (i, f, g, o) to (i, f, o, g).
    def pgates(w):
        return jnp.concatenate(
            [w[..., :2 * H], w[..., 3 * H:4 * H], w[..., 2 * H:3 * H]], axis=-1)

    wih = jnp.concatenate([pgates(params["wih_f"]),
                           pgates(params["wih_b"])], axis=1)          # (nIn, 8H)
    whh_f = pgates(params["whh_f"])                                    # (H, 4H)
    whh_b = pgates(params["whh_b"])                                    # (H, 4H)
    bias = jnp.concatenate([pgates(params["b_f"]),
                            pgates(params["b_b"])], axis=1)            # (1, 8H)

    wemb_f = jnp.zeros((H, nOutP), jnp.float32).at[:, :nOut].set(params["w_emb"][:H])
    wemb_b = jnp.zeros((H, nOutP), jnp.float32).at[:, :nOut].set(params["w_emb"][H:])
    bemb = jnp.zeros((1, nOutP), jnp.float32).at[:, :nOut].set(params["b_emb"])

    # Time-major rows (row index = t*Bp + b), batch zero-padded.
    xp = jnp.zeros((T, Bp, nIn), jnp.float32).at[:, :B, :].set(x)
    x2d = xp.reshape(T * Bp, nIn)

    kernel = functools.partial(_bilstm_kernel, T=T, Bp=Bp, H=H)

    out = pl.pallas_call(
        kernel,
        grid_spec=pltpu.PrefetchScalarGridSpec(
            num_scalar_prefetch=0,
            # Everything fits comfortably in VMEM at these sizes -> one kernel
            # invocation with full-array blocks.
            grid=(1,),
            in_specs=[
                pl.BlockSpec((T * Bp, nIn), lambda i: (0, 0)),    # x (passed once)
                pl.BlockSpec((nIn, 2 * G), lambda i: (0, 0)),     # [W_ih_f | W_ih_b]
                pl.BlockSpec((H, G), lambda i: (0, 0)),           # W_hh forward
                pl.BlockSpec((H, G), lambda i: (0, 0)),           # W_hh backward
                pl.BlockSpec((1, 2 * G), lambda i: (0, 0)),       # fused gate biases
                pl.BlockSpec((H, nOutP), lambda i: (0, 0)),       # W_emb (fwd half, padded)
                pl.BlockSpec((H, nOutP), lambda i: (0, 0)),       # W_emb (bwd half, padded)
                pl.BlockSpec((1, nOutP), lambda i: (0, 0)),       # b_emb (padded)
            ],
            out_specs=pl.BlockSpec((T * Bp, nOutP), lambda i: (0, 0)),
            scratch_shapes=[
                pltpu.VMEM((T * Bp, 2 * G), jnp.float32),         # x projections (both dirs)
            ],
        ),
        out_shape=jax.ShapeDtypeStruct((T * Bp, nOutP), jnp.float32),
        compiler_params=pltpu.CompilerParams(
            dimension_semantics=("arbitrary",)),
    )(x2d, wih, whh_f, whh_b, bias, wemb_f, wemb_b, bemb)

    # Drop batch / lane padding.
    return out.reshape(T, Bp, nOutP)[:, :B, :nOut]


# ----------------------------------------------------------------------------
# Pure-JAX reference (lax.scan, torch gate order) for correctness checking.
# ----------------------------------------------------------------------------
def _ref_forward(x, params):
    T, B, _ = x.shape
    H = params["whh_f"].shape[0]

    def run_dir(xs, wih, whh, bias):
        def step(carry, xt):
            h, c = carry
            gates = (jnp.dot(xt, wih, precision=lax.Precision.HIGHEST)
                     + jnp.dot(h, whh, precision=lax.Precision.HIGHEST) + bias)
            i = jax.nn.sigmoid(gates[:, :H])
            f = jax.nn.sigmoid(gates[:, H:2 * H])
            g = jnp.tanh(gates[:, 2 * H:3 * H])
            o = jax.nn.sigmoid(gates[:, 3 * H:])
            c = f * c + i * g
            h = o * jnp.tanh(c)
            return (h, c), h
        init = (jnp.zeros((B, H), jnp.float32), jnp.zeros((B, H), jnp.float32))
        _, hs = lax.scan(step, init, xs)
        return hs

    h_f = run_dir(x, params["wih_f"], params["whh_f"], params["b_f"])
    h_b = run_dir(x[::-1], params["wih_b"], params["whh_b"], params["b_b"])[::-1]
    rec = jnp.concatenate([h_f, h_b], axis=-1).reshape(T * B, 2 * H)
    out = (jnp.dot(rec, params["w_emb"], precision=lax.Precision.HIGHEST)
           + params["b_emb"])
    return out.reshape(T, B, -1)


if __name__ == "__main__":
    # Small shapes consistent with the module: input (T, B, nIn)
    T, B, nIn, H, nOut = 8, 2, 16, 32, 16

    key = jax.random.PRNGKey(0)
    keys = jax.random.split(key, 9)
    k = 1.0 / (H ** 0.5)

    def u(kk, shape):
        return jax.random.uniform(kk, shape, jnp.float32, -k, k)

    # Weights stored already transposed (in_dim, 4H) / (2H, nOut) for row-major
    # matmuls, torch gate order (i, f, g, o); b_* = torch b_ih + b_hh.
    params = dict(
        wih_f=u(keys[0], (nIn, 4 * H)),
        whh_f=u(keys[1], (H, 4 * H)),
        b_f=u(keys[2], (1, 4 * H)),
        wih_b=u(keys[3], (nIn, 4 * H)),
        whh_b=u(keys[4], (H, 4 * H)),
        b_b=u(keys[5], (1, 4 * H)),
        w_emb=u(keys[6], (2 * H, nOut)),
        b_emb=u(keys[7], (1, nOut)),
    )
    x = jax.random.normal(keys[8], (T, B, nIn), jnp.float32)

    out = jax.block_until_ready(bidirectional_lstm_forward(x, params))
    ref = jax.block_until_ready(_ref_forward(x, params))

    assert out.shape == (T, B, nOut), out.shape
    err = float(jnp.max(jnp.abs(out - ref)))
    assert err < 2e-3, f"max abs error {err}"
    print("KERNEL_OK")
</pallas_src>

<mosaic_0001>
module attributes {stable_mosaic.version = 11 : i64} {
  func.func @_bilstm_kernel(%arg0: i32, %arg1: memref<64x16xf32, #tpu.memory_space<vmem>>, %arg2: memref<16x256xf32, #tpu.memory_space<vmem>>, %arg3: memref<32x128xf32, #tpu.memory_space<vmem>>, %arg4: memref<32x128xf32, #tpu.memory_space<vmem>>, %arg5: memref<1x256xf32, #tpu.memory_space<vmem>>, %arg6: memref<32x128xf32, #tpu.memory_space<vmem>>, %arg7: memref<32x128xf32, #tpu.memory_space<vmem>>, %arg8: memref<1x128xf32, #tpu.memory_space<vmem>>, %arg9: memref<64x128xf32, #tpu.memory_space<vmem>>, %arg10: memref<64x256xf32, #tpu.memory_space<vmem>>) attributes {dimension_semantics = [#tpu.dimension_semantics<arbitrary>], iteration_bounds = array<i64: 1>, scalar_prefetch = 0 : i64, scratch_operands = 1 : i64, tpu.core_type = #tpu.core_type<tc>, window_params = [{pipeline_mode = #tpu.pipeline_mode<synchronous>, transform_indices = @transform_0, window_bounds = array<i64: 64, 16>}, {pipeline_mode = #tpu.pipeline_mode<synchronous>, transform_indices = @transform_1, window_bounds = array<i64: 16, 256>}, {pipeline_mode = #tpu.pipeline_mode<synchronous>, transform_indices = @transform_2, window_bounds = array<i64: 32, 128>}, {pipeline_mode = #tpu.pipeline_mode<synchronous>, transform_indices = @transform_3, window_bounds = array<i64: 32, 128>}, {pipeline_mode = #tpu.pipeline_mode<synchronous>, transform_indices = @transform_4, window_bounds = array<i64: 1, 256>}, {pipeline_mode = #tpu.pipeline_mode<synchronous>, transform_indices = @transform_5, window_bounds = array<i64: 32, 128>}, {pipeline_mode = #tpu.pipeline_mode<synchronous>, transform_indices = @transform_6, window_bounds = array<i64: 32, 128>}, {pipeline_mode = #tpu.pipeline_mode<synchronous>, transform_indices = @transform_7, window_bounds = array<i64: 1, 128>}, {pipeline_mode = #tpu.pipeline_mode<synchronous>, transform_indices = @transform_8, window_bounds = array<i64: 64, 128>}]} {
    %c0 = arith.constant 0 : index
    %c0_0 = arith.constant 0 : index
    %0 = vector.load %arg1[%c0, %c0_0] : memref<64x16xf32, #tpu.memory_space<vmem>>, vector<64x16xf32>
    %c0_1 = arith.constant 0 : index
    %c0_2 = arith.constant 0 : index
    %1 = vector.load %arg2[%c0_1, %c0_2] : memref<16x256xf32, #tpu.memory_space<vmem>>, vector<16x256xf32>
    %cst = arith.constant dense<0.000000e+00> : vector<64x256xf32>
    %2 = tpu.matmul %0, %1, %cst {dimension_numbers = #tpu.dot_dimension_numbers<[1], [0], [0], [1], [0, 0, 1, 1], [], []>} : vector<64x16xf32>, vector<16x256xf32>, vector<64x256xf32> -> vector<64x256xf32>
    %c0_3 = arith.constant 0 : index
    %c0_4 = arith.constant 0 : index
    %3 = vector.load %arg5[%c0_3, %c0_4] : memref<1x256xf32, #tpu.memory_space<vmem>>, vector<1x256xf32>
    %4 = vector.broadcast %3 : vector<1x256xf32> to vector<64x256xf32>
    %5 = arith.addf %2, %4 : vector<64x256xf32>
    %c0_5 = arith.constant 0 : index
    %c0_6 = arith.constant 0 : index
    %6 = vector.load %arg10[%c0_5, %c0_6] : memref<64x256xf32, #tpu.memory_space<vmem>>, vector<64x256xf32>
    tpu.vector_store %arg10[%c0_5, %c0_6], %5 {strides = array<i32>} : memref<64x256xf32, #tpu.memory_space<vmem>>, vector<64x256xf32>,
    %c0_7 = arith.constant 0 : index
    %c0_8 = arith.constant 0 : index
    %7 = vector.load %arg3[%c0_7, %c0_8] : memref<32x128xf32, #tpu.memory_space<vmem>>, vector<32x128xf32>
    %c0_9 = arith.constant 0 : index
    %c0_10 = arith.constant 0 : index
    %8 = vector.load %arg4[%c0_9, %c0_10] : memref<32x128xf32, #tpu.memory_space<vmem>>, vector<32x128xf32>
    %cst_11 = arith.constant 0.000000e+00 : f32
    %9 = vector.broadcast %cst_11 : f32 to vector<8x32xf32>
    %cst_12 = arith.constant 0.000000e+00 : f32
    %10 = vector.broadcast %cst_12 : f32 to vector<8x32xf32>
    %cst_13 = arith.constant 0.000000e+00 : f32
    %11 = vector.broadcast %cst_13 : f32 to vector<8x32xf32>
    %cst_14 = arith.constant 0.000000e+00 : f32
    %12 = vector.broadcast %cst_14 : f32 to vector<8x32xf32>
    %cst_15 = arith.constant dense<0.000000e+00> : vector<8x128xf32>
    %13 = tpu.matmul %9, %7, %cst_15 {dimension_numbers = #tpu.dot_dimension_numbers<[1], [0], [0], [1], [0, 0, 1, 1], [], []>} : vector<8x32xf32>, vector<32x128xf32>, vector<8x128xf32> -> vector<8x128xf32>
    %c0_16 = arith.constant 0 : index
    %c0_17 = arith.constant 0 : index
    %14 = vector.load %arg10[%c0_16, %c0_17] : memref<64x256xf32, #tpu.memory_space<vmem>>, vector<8x128xf32>
    %15 = arith.addf %13, %14 : vector<8x128xf32>
    %cst_18 = arith.constant dense<0.000000e+00> : vector<8x128xf32>
    %16 = tpu.matmul %10, %8, %cst_18 {dimension_numbers = #tpu.dot_dimension_numbers<[1], [0], [0], [1], [0, 0, 1, 1], [], []>} : vector<8x32xf32>, vector<32x128xf32>, vector<8x128xf32> -> vector<8x128xf32>
    %c56 = arith.constant 56 : index
    %c128 = arith.constant 128 : index
    %17 = vector.load %arg10[%c56, %c128] : memref<64x256xf32, #tpu.memory_space<vmem>>, vector<8x128xf32>
    %18 = arith.addf %16, %17 : vector<8x128xf32>
    %19 = vector.extract_strided_slice %15 {offsets = [0, 0], sizes = [8, 96], strides = [1, 1]} : vector<8x128xf32> to vector<8x96xf32>
    %20 = arith.negf %19 : vector<8x96xf32>
    %21 = math.exp %20 : vector<8x96xf32>
    %cst_19 = arith.constant 1.000000e+00 : f32
    %22 = vector.broadcast %cst_19 : f32 to vector<8x96xf32>
    %23 = arith.addf %22, %21 : vector<8x96xf32>
    %24 = arith.divf %22, %23 : vector<8x96xf32>
    %25 = vector.extract_strided_slice %15 {offsets = [0, 96], sizes = [8, 32], strides = [1, 1]} : vector<8x128xf32> to vector<8x32xf32>
    %26 = math.tanh %25 : vector<8x32xf32>
    %27 = vector.extract_strided_slice %24 {offsets = [0, 0], sizes = [8, 32], strides = [1, 1]} : vector<8x96xf32> to vector<8x32xf32>
    %28 = vector.extract_strided_slice %24 {offsets = [0, 32], sizes = [8, 32], strides = [1, 1]} : vector<8x96xf32> to vector<8x32xf32>
    %29 = vector.extract_strided_slice %24 {offsets = [0, 64], sizes = [8, 32], strides = [1, 1]} : vector<8x96xf32> to vector<8x32xf32>
    %30 = arith.mulf %28, %11 : vector<8x32xf32>
    %31 = arith.mulf %27, %26 : vector<8x32xf32>
    %32 = arith.addf %30, %31 : vector<8x32xf32>
    %33 = math.tanh %32 : vector<8x32xf32>
    %34 = arith.mulf %29, %33 : vector<8x32xf32>
    %35 = vector.extract_strided_slice %18 {offsets = [0, 0], sizes = [8, 96], strides = [1, 1]} : vector<8x128xf32> to vector<8x96xf32>
    %36 = arith.negf %35 : vector<8x96xf32>
    %37 = math.exp %36 : vector<8x96xf32>
    %cst_20 = arith.constant 1.000000e+00 : f32
    %38 = vector.broadcast %cst_20 : f32 to vector<8x96xf32>
    %39 = arith.addf %38, %37 : vector<8x96xf32>
    %40 = arith.divf %38, %39 : vector<8x96xf32>
    %41 = vector.extract_strided_slice %18 {offsets = [0, 96], sizes = [8, 32], strides = [1, 1]} : vector<8x128xf32> to vector<8x32xf32>
    %42 = math.tanh %41 : vector<8x32xf32>
    %43 = vector.extract_strided_slice %40 {offsets = [0, 0], sizes = [8, 32], strides = [1, 1]} : vector<8x96xf32> to vector<8x32xf32>
    %44 = vector.extract_strided_slice %40 {offsets = [0, 32], sizes = [8, 32], strides = [1, 1]} : vector<8x96xf32> to vector<8x32xf32>
    %45 = vector.extract_strided_slice %40 {offsets = [0, 64], sizes = [8, 32], strides = [1, 1]} : vector<8x96xf32> to vector<8x32xf32>
    %46 = arith.mulf %44, %12 : vector<8x32xf32>
    %47 = arith.mulf %43, %42 : vector<8x32xf32>
    %48 = arith.addf %46, %47 : vector<8x32xf32>
    %49 = math.tanh %48 : vector<8x32xf32>
    %50 = arith.mulf %45, %49 : vector<8x32xf32>
    %cst_21 = arith.constant dense<0.000000e+00> : vector<8x128xf32>
    %51 = tpu.matmul %34, %7, %cst_21 {dimension_numbers = #tpu.dot_dimension_numbers<[1], [0], [0], [1], [0, 0, 1, 1], [], []>} : vector<8x32xf32>, vector<32x128xf32>, vector<8x128xf32> -> vector<8x128xf32>
    %c8 = arith.constant 8 : index
    %c0_22 = arith.constant 0 : index
    %52 = vector.load %arg10[%c8, %c0_22] : memref<64x256xf32, #tpu.memory_space<vmem>>, vector<8x128xf32>
    %53 = arith.addf %51, %52 : vector<8x128xf32>
    %cst_23 = arith.constant dense<0.000000e+00> : vector<8x128xf32>
    %54 = tpu.matmul %50, %8, %cst_23 {dimension_numbers = #tpu.dot_dimension_numbers<[1], [0], [0], [1], [0, 0, 1, 1], [], []>} : vector<8x32xf32>, vector<32x128xf32>, vector<8x128xf32> -> vector<8x128xf32>
    %c48 = arith.constant 48 : index
    %c128_24 = arith.constant 128 : index
    %55 = vector.load %arg10[%c48, %c128_24] : memref<64x256xf32, #tpu.memory_space<vmem>>, vector<8x128xf32>
    %56 = arith.addf %54, %55 : vector<8x128xf32>
    %57 = vector.extract_strided_slice %53 {offsets = [0, 0], sizes = [8, 96], strides = [1, 1]} : vector<8x128xf32> to vector<8x96xf32>
    %58 = arith.negf %57 : vector<8x96xf32>
    %59 = math.exp %58 : vector<8x96xf32>
    %cst_25 = arith.constant 1.000000e+00 : f32
    %60 = vector.broadcast %cst_25 : f32 to vector<8x96xf32>
    %61 = arith.addf %60, %59 : vector<8x96xf32>
    %62 = arith.divf %60, %61 : vector<8x96xf32>
    %63 = vector.extract_strided_slice %53 {offsets = [0, 96], sizes = [8, 32], strides = [1, 1]} : vector<8x128xf32> to vector<8x32xf32>
    %64 = math.tanh %63 : vector<8x32xf32>
    %65 = vector.extract_strided_slice %62 {offsets = [0, 0], sizes = [8, 32], strides = [1, 1]} : vector<8x96xf32> to vector<8x32xf32>
    %66 = vector.extract_strided_slice %62 {offsets = [0, 32], sizes = [8, 32], strides = [1, 1]} : vector<8x96xf32> to vector<8x32xf32>
    %67 = vector.extract_strided_slice %62 {offsets = [0, 64], sizes = [8, 32], strides = [1, 1]} : vector<8x96xf32> to vector<8x32xf32>
    %68 = arith.mulf %66, %32 : vector<8x32xf32>
    %69 = arith.mulf %65, %64 : vector<8x32xf32>
    %70 = arith.addf %68, %69 : vector<8x32xf32>
    %71 = math.tanh %70 : vector<8x32xf32>
    %72 = arith.mulf %67, %71 : vector<8x32xf32>
    %73 = vector.extract_strided_slice %56 {offsets = [0, 0], sizes = [8, 96], strides = [1, 1]} : vector<8x128xf32> to vector<8x96xf32>
    %74 = arith.negf %73 : vector<8x96xf32>
    %75 = math.exp %74 : vector<8x96xf32>
    %cst_26 = arith.constant 1.000000e+00 : f32
    %76 = vector.broadcast %cst_26 : f32 to vector<8x96xf32>
    %77 = arith.addf %76, %75 : vector<8x96xf32>
    %78 = arith.divf %76, %77 : vector<8x96xf32>
    %79 = vector.extract_strided_slice %56 {offsets = [0, 96], sizes = [8, 32], strides = [1, 1]} : vector<8x128xf32> to vector<8x32xf32>
    %80 = math.tanh %79 : vector<8x32xf32>
    %81 = vector.extract_strided_slice %78 {offsets = [0, 0], sizes = [8, 32], strides = [1, 1]} : vector<8x96xf32> to vector<8x32xf32>
    %82 = vector.extract_strided_slice %78 {offsets = [0, 32], sizes = [8, 32], strides = [1, 1]} : vector<8x96xf32> to vector<8x32xf32>
    %83 = vector.extract_strided_slice %78 {offsets = [0, 64], sizes = [8, 32], strides = [1, 1]} : vector<8x96xf32> to vector<8x32xf32>
    %84 = arith.mulf %82, %48 : vector<8x32xf32>
    %85 = arith.mulf %81, %80 : vector<8x32xf32>
    %86 = arith.addf %84, %85 : vector<8x32xf32>
    %87 = math.tanh %86 : vector<8x32xf32>
    %88 = arith.mulf %83, %87 : vector<8x32xf32>
    %cst_27 = arith.constant dense<0.000000e+00> : vector<8x128xf32>
    %89 = tpu.matmul %72, %7, %cst_27 {dimension_numbers = #tpu.dot_dimension_numbers<[1], [0], [0], [1], [0, 0, 1, 1], [], []>} : vector<8x32xf32>, vector<32x128xf32>, vector<8x128xf32> -> vector<8x128xf32>
    %c16 = arith.constant 16 : index
    %c0_28 = arith.constant 0 : index
    %90 = vector.load %arg10[%c16, %c0_28] : memref<64x256xf32, #tpu.memory_space<vmem>>, vector<8x128xf32>
    %91 = arith.addf %89, %90 : vector<8x128xf32>
    %cst_29 = arith.constant dense<0.000000e+00> : vector<8x128xf32>
    %92 = tpu.matmul %88, %8, %cst_29 {dimension_numbers = #tpu.dot_dimension_numbers<[1], [0], [0], [1], [0, 0, 1, 1], [], []>} : vector<8x32xf32>, vector<32x128xf32>, vector<8x128xf32> -> vector<8x128xf32>
    %c40 = arith.constant 40 : index
    %c128_30 = arith.constant 128 : index
    %93 = vector.load %arg10[%c40, %c128_30] : memref<64x256xf32, #tpu.memory_space<vmem>>, vector<8x128xf32>
    %94 = arith.addf %92, %93 : vector<8x128xf32>
    %95 = vector.extract_strided_slice %91 {offsets = [0, 0], sizes = [8, 96], strides = [1, 1]} : vector<8x128xf32> to vector<8x96xf32>
    %96 = arith.negf %95 : vector<8x96xf32>
    %97 = math.exp %96 : vector<8x96xf32>
    %cst_31 = arith.constant 1.000000e+00 : f32
    %98 = vector.broadcast %cst_31 : f32 to vector<8x96xf32>
    %99 = arith.addf %98, %97 : vector<8x96xf32>
    %100 = arith.divf %98, %99 : vector<8x96xf32>
    %101 = vector.extract_strided_slice %91 {offsets = [0, 96], sizes = [8, 32], strides = [1, 1]} : vector<8x128xf32> to vector<8x32xf32>
    %102 = math.tanh %101 : vector<8x32xf32>
    %103 = vector.extract_strided_slice %100 {offsets = [0, 0], sizes = [8, 32], strides = [1, 1]} : vector<8x96xf32> to vector<8x32xf32>
    %104 = vector.extract_strided_slice %100 {offsets = [0, 32], sizes = [8, 32], strides = [1, 1]} : vector<8x96xf32> to vector<8x32xf32>
    %105 = vector.extract_strided_slice %100 {offsets = [0, 64], sizes = [8, 32], strides = [1, 1]} : vector<8x96xf32> to vector<8x32xf32>
    %106 = arith.mulf %104, %70 : vector<8x32xf32>
    %107 = arith.mulf %103, %102 : vector<8x32xf32>
    %108 = arith.addf %106, %107 : vector<8x32xf32>
    %109 = math.tanh %108 : vector<8x32xf32>
    %110 = arith.mulf %105, %109 : vector<8x32xf32>
    %111 = vector.extract_strided_slice %94 {offsets = [0, 0], sizes = [8, 96], strides = [1, 1]} : vector<8x128xf32> to vector<8x96xf32>
    %112 = arith.negf %111 : vector<8x96xf32>
    %113 = math.exp %112 : vector<8x96xf32>
    %cst_32 = arith.constant 1.000000e+00 : f32
    %114 = vector.broadcast %cst_32 : f32 to vector<8x96xf32>
    %115 = arith.addf %114, %113 : vector<8x96xf32>
    %116 = arith.divf %114, %115 : vector<8x96xf32>
    %117 = vector.extract_strided_slice %94 {offsets = [0, 96], sizes = [8, 32], strides = [1, 1]} : vector<8x128xf32> to vector<8x32xf32>
    %118 = math.tanh %117 : vector<8x32xf32>
    %119 = vector.extract_strided_slice %116 {offsets = [0, 0], sizes = [8, 32], strides = [1, 1]} : vector<8x96xf32> to vector<8x32xf32>
    %120 = vector.extract_strided_slice %116 {offsets = [0, 32], sizes = [8, 32], strides = [1, 1]} : vector<8x96xf32> to vector<8x32xf32>
    %121 = vector.extract_strided_slice %116 {offsets = [0, 64], sizes = [8, 32], strides = [1, 1]} : vector<8x96xf32> to vector<8x32xf32>
    %122 = arith.mulf %120, %86 : vector<8x32xf32>
    %123 = arith.mulf %119, %118 : vector<8x32xf32>
    %124 = arith.addf %122, %123 : vector<8x32xf32>
    %125 = math.tanh %124 : vector<8x32xf32>
    %126 = arith.mulf %121, %125 : vector<8x32xf32>
    %cst_33 = arith.constant dense<0.000000e+00> : vector<8x128xf32>
    %127 = tpu.matmul %110, %7, %cst_33 {dimension_numbers = #tpu.dot_dimension_numbers<[1], [0], [0], [1], [0, 0, 1, 1], [], []>} : vector<8x32xf32>, vector<32x128xf32>, vector<8x128xf32> -> vector<8x128xf32>
    %c24 = arith.constant 24 : index
    %c0_34 = arith.constant 0 : index
    %128 = vector.load %arg10[%c24, %c0_34] : memref<64x256xf32, #tpu.memory_space<vmem>>, vector<8x128xf32>
    %129 = arith.addf %127, %128 : vector<8x128xf32>
    %cst_35 = arith.constant dense<0.000000e+00> : vector<8x128xf32>
    %130 = tpu.matmul %126, %8, %cst_35 {dimension_numbers = #tpu.dot_dimension_numbers<[1], [0], [0], [1], [0, 0, 1, 1], [], []>} : vector<8x32xf32>, vector<32x128xf32>, vector<8x128xf32> -> vector<8x128xf32>
    %c32 = arith.constant 32 : index
    %c128_36 = arith.constant 128 : index
    %131 = vector.load %arg10[%c32, %c128_36] : memref<64x256xf32, #tpu.memory_space<vmem>>, vector<8x128xf32>
    %132 = arith.addf %130, %131 : vector<8x128xf32>
    %133 = vector.extract_strided_slice %129 {offsets = [0, 0], sizes = [8, 96], strides = [1, 1]} : vector<8x128xf32> to vector<8x96xf32>
    %134 = arith.negf %133 : vector<8x96xf32>
    %135 = math.exp %134 : vector<8x96xf32>
    %cst_37 = arith.constant 1.000000e+00 : f32
    %136 = vector.broadcast %cst_37 : f32 to vector<8x96xf32>
    %137 = arith.addf %136, %135 : vector<8x96xf32>
    %138 = arith.divf %136, %137 : vector<8x96xf32>
    %139 = vector.extract_strided_slice %129 {offsets = [0, 96], sizes = [8, 32], strides = [1, 1]} : vector<8x128xf32> to vector<8x32xf32>
    %140 = math.tanh %139 : vector<8x32xf32>
    %141 = vector.extract_strided_slice %138 {offsets = [0, 0], sizes = [8, 32], strides = [1, 1]} : vector<8x96xf32> to vector<8x32xf32>
    %142 = vector.extract_strided_slice %138 {offsets = [0, 32], sizes = [8, 32], strides = [1, 1]} : vector<8x96xf32> to vector<8x32xf32>
    %143 = vector.extract_strided_slice %138 {offsets = [0, 64], sizes = [8, 32], strides = [1, 1]} : vector<8x96xf32> to vector<8x32xf32>
    %144 = arith.mulf %142, %108 : vector<8x32xf32>
    %145 = arith.mulf %141, %140 : vector<8x32xf32>
    %146 = arith.addf %144, %145 : vector<8x32xf32>
    %147 = math.tanh %146 : vector<8x32xf32>
    %148 = arith.mulf %143, %147 : vector<8x32xf32>
    %149 = vector.extract_strided_slice %132 {offsets = [0, 0], sizes = [8, 96], strides = [1, 1]} : vector<8x128xf32> to vector<8x96xf32>
    %150 = arith.negf %149 : vector<8x96xf32>
    %151 = math.exp %150 : vector<8x96xf32>
    %cst_38 = arith.constant 1.000000e+00 : f32
    %152 = vector.broadcast %cst_38 : f32 to vector<8x96xf32>
    %153 = arith.addf %152, %151 : vector<8x96xf32>
    %154 = arith.divf %152, %153 : vector<8x96xf32>
    %155 = vector.extract_strided_slice %132 {offsets = [0, 96], sizes = [8, 32], strides = [1, 1]} : vector<8x128xf32> to vector<8x32xf32>
    %156 = math.tanh %155 : vector<8x32xf32>
    %157 = vector.extract_strided_slice %154 {offsets = [0, 0], sizes = [8, 32], strides = [1, 1]} : vector<8x96xf32> to vector<8x32xf32>
    %158 = vector.extract_strided_slice %154 {offsets = [0, 32], sizes = [8, 32], strides = [1, 1]} : vector<8x96xf32> to vector<8x32xf32>
    %159 = vector.extract_strided_slice %154 {offsets = [0, 64], sizes = [8, 32], strides = [1, 1]} : vector<8x96xf32> to vector<8x32xf32>
    %160 = arith.mulf %158, %124 : vector<8x32xf32>
    %161 = arith.mulf %157, %156 : vector<8x32xf32>
    %162 = arith.addf %160, %161 : vector<8x32xf32>
    %163 = math.tanh %162 : vector<8x32xf32>
    %164 = arith.mulf %159, %163 : vector<8x32xf32>
    %cst_39 = arith.constant dense<0.000000e+00> : vector<8x128xf32>
    %165 = tpu.matmul %148, %7, %cst_39 {dimension_numbers = #tpu.dot_dimension_numbers<[1], [0], [0], [1], [0, 0, 1, 1], [], []>} : vector<8x32xf32>, vector<32x128xf32>, vector<8x128xf32> -> vector<8x128xf32>
    %c32_40 = arith.constant 32 : index
    %c0_41 = arith.constant 0 : index
    %166 = vector.load %arg10[%c32_40, %c0_41] : memref<64x256xf32, #tpu.memory_space<vmem>>, vector<8x128xf32>
    %167 = arith.addf %165, %166 : vector<8x128xf32>
    %cst_42 = arith.constant dense<0.000000e+00> : vector<8x128xf32>
    %168 = tpu.matmul %164, %8, %cst_42 {dimension_numbers = #tpu.dot_dimension_numbers<[1], [0], [0], [1], [0, 0, 1, 1], [], []>} : vector<8x32xf32>, vector<32x128xf32>, vector<8x128xf32> -> vector<8x128xf32>
    %c24_43 = arith.constant 24 : index
    %c128_44 = arith.constant 128 : index
    %169 = vector.load %arg10[%c24_43, %c128_44] : memref<64x256xf32, #tpu.memory_space<vmem>>, vector<8x128xf32>
    %170 = arith.addf %168, %169 : vector<8x128xf32>
    %171 = vector.extract_strided_slice %167 {offsets = [0, 0], sizes = [8, 96], strides = [1, 1]} : vector<8x128xf32> to vector<8x96xf32>
    %172 = arith.negf %171 : vector<8x96xf32>
    %173 = math.exp %172 : vector<8x96xf32>
    %cst_45 = arith.constant 1.000000e+00 : f32
    %174 = vector.broadcast %cst_45 : f32 to vector<8x96xf32>
    %175 = arith.addf %174, %173 : vector<8x96xf32>
    %176 = arith.divf %174, %175 : vector<8x96xf32>
    %177 = vector.extract_strided_slice %167 {offsets = [0, 96], sizes = [8, 32], strides = [1, 1]} : vector<8x128xf32> to vector<8x32xf32>
    %178 = math.tanh %177 : vector<8x32xf32>
    %179 = vector.extract_strided_slice %176 {offsets = [0, 0], sizes = [8, 32], strides = [1, 1]} : vector<8x96xf32> to vector<8x32xf32>
    %180 = vector.extract_strided_slice %176 {offsets = [0, 32], sizes = [8, 32], strides = [1, 1]} : vector<8x96xf32> to vector<8x32xf32>
    %181 = vector.extract_strided_slice %176 {offsets = [0, 64], sizes = [8, 32], strides = [1, 1]} : vector<8x96xf32> to vector<8x32xf32>
    %182 = arith.mulf %180, %146 : vector<8x32xf32>
    %183 = arith.mulf %179, %178 : vector<8x32xf32>
    %184 = arith.addf %182, %183 : vector<8x32xf32>
    %185 = math.tanh %184 : vector<8x32xf32>
    %186 = arith.mulf %181, %185 : vector<8x32xf32>
    %187 = vector.extract_strided_slice %170 {offsets = [0, 0], sizes = [8, 96], strides = [1, 1]} : vector<8x128xf32> to vector<8x96xf32>
    %188 = arith.negf %187 : vector<8x96xf32>
    %189 = math.exp %188 : vector<8x96xf32>
    %cst_46 = arith.constant 1.000000e+00 : f32
    %190 = vector.broadcast %cst_46 : f32 to vector<8x96xf32>
    %191 = arith.addf %190, %189 : vector<8x96xf32>
    %192 = arith.divf %190, %191 : vector<8x96xf32>
    %193 = vector.extract_strided_slice %170 {offsets = [0, 96], sizes = [8, 32], strides = [1, 1]} : vector<8x128xf32> to vector<8x32xf32>
    %194 = math.tanh %193 : vector<8x32xf32>
    %195 = vector.extract_strided_slice %192 {offsets = [0, 0], sizes = [8, 32], strides = [1, 1]} : vector<8x96xf32> to vector<8x32xf32>
    %196 = vector.extract_strided_slice %192 {offsets = [0, 32], sizes = [8, 32], strides = [1, 1]} : vector<8x96xf32> to vector<8x32xf32>
    %197 = vector.extract_strided_slice %192 {offsets = [0, 64], sizes = [8, 32], strides = [1, 1]} : vector<8x96xf32> to vector<8x32xf32>
    %198 = arith.mulf %196, %162 : vector<8x32xf32>
    %199 = arith.mulf %195, %194 : vector<8x32xf32>
    %200 = arith.addf %198, %199 : vector<8x32xf32>
    %201 = math.tanh %200 : vector<8x32xf32>
    %202 = arith.mulf %197, %201 : vector<8x32xf32>
    %cst_47 = arith.constant dense<0.000000e+00> : vector<8x128xf32>
    %203 = tpu.matmul %186, %7, %cst_47 {dimension_numbers = #tpu.dot_dimension_numbers<[1], [0], [0], [1], [0, 0, 1, 1], [], []>} : vector<8x32xf32>, vector<32x128xf32>, vector<8x128xf32> -> vector<8x128xf32>
    %c40_48 = arith.constant 40 : index
    %c0_49 = arith.constant 0 : index
    %204 = vector.load %arg10[%c40_48, %c0_49] : memref<64x256xf32, #tpu.memory_space<vmem>>, vector<8x128xf32>
    %205 = arith.addf %203, %204 : vector<8x128xf32>
    %cst_50 = arith.constant dense<0.000000e+00> : vector<8x128xf32>
    %206 = tpu.matmul %202, %8, %cst_50 {dimension_numbers = #tpu.dot_dimension_numbers<[1], [0], [0], [1], [0, 0, 1, 1], [], []>} : vector<8x32xf32>, vector<32x128xf32>, vector<8x128xf32> -> vector<8x128xf32>
    %c16_51 = arith.constant 16 : index
    %c128_52 = arith.constant 128 : index
    %207 = vector.load %arg10[%c16_51, %c128_52] : memref<64x256xf32, #tpu.memory_space<vmem>>, vector<8x128xf32>
    %208 = arith.addf %206, %207 : vector<8x128xf32>
    %209 = vector.extract_strided_slice %205 {offsets = [0, 0], sizes = [8, 96], strides = [1, 1]} : vector<8x128xf32> to vector<8x96xf32>
    %210 = arith.negf %209 : vector<8x96xf32>
    %211 = math.exp %210 : vector<8x96xf32>
    %cst_53 = arith.constant 1.000000e+00 : f32
    %212 = vector.broadcast %cst_53 : f32 to vector<8x96xf32>
    %213 = arith.addf %212, %211 : vector<8x96xf32>
    %214 = arith.divf %212, %213 : vector<8x96xf32>
    %215 = vector.extract_strided_slice %205 {offsets = [0, 96], sizes = [8, 32], strides = [1, 1]} : vector<8x128xf32> to vector<8x32xf32>
    %216 = math.tanh %215 : vector<8x32xf32>
    %217 = vector.extract_strided_slice %214 {offsets = [0, 0], sizes = [8, 32], strides = [1, 1]} : vector<8x96xf32> to vector<8x32xf32>
    %218 = vector.extract_strided_slice %214 {offsets = [0, 32], sizes = [8, 32], strides = [1, 1]} : vector<8x96xf32> to vector<8x32xf32>
    %219 = vector.extract_strided_slice %214 {offsets = [0, 64], sizes = [8, 32], strides = [1, 1]} : vector<8x96xf32> to vector<8x32xf32>
    %220 = arith.mulf %218, %184 : vector<8x32xf32>
    %221 = arith.mulf %217, %216 : vector<8x32xf32>
    %222 = arith.addf %220, %221 : vector<8x32xf32>
    %223 = math.tanh %222 : vector<8x32xf32>
    %224 = arith.mulf %219, %223 : vector<8x32xf32>
    %225 = vector.extract_strided_slice %208 {offsets = [0, 0], sizes = [8, 96], strides = [1, 1]} : vector<8x128xf32> to vector<8x96xf32>
    %226 = arith.negf %225 : vector<8x96xf32>
    %227 = math.exp %226 : vector<8x96xf32>
    %cst_54 = arith.constant 1.000000e+00 : f32
    %228 = vector.broadcast %cst_54 : f32 to vector<8x96xf32>
    %229 = arith.addf %228, %227 : vector<8x96xf32>
    %230 = arith.divf %228, %229 : vector<8x96xf32>
    %231 = vector.extract_strided_slice %208 {offsets = [0, 96], sizes = [8, 32], strides = [1, 1]} : vector<8x128xf32> to vector<8x32xf32>
    %232 = math.tanh %231 : vector<8x32xf32>
    %233 = vector.extract_strided_slice %230 {offsets = [0, 0], sizes = [8, 32], strides = [1, 1]} : vector<8x96xf32> to vector<8x32xf32>
    %234 = vector.extract_strided_slice %230 {offsets = [0, 32], sizes = [8, 32], strides = [1, 1]} : vector<8x96xf32> to vector<8x32xf32>
    %235 = vector.extract_strided_slice %230 {offsets = [0, 64], sizes = [8, 32], strides = [1, 1]} : vector<8x96xf32> to vector<8x32xf32>
    %236 = arith.mulf %234, %200 : vector<8x32xf32>
    %237 = arith.mulf %233, %232 : vector<8x32xf32>
    %238 = arith.addf %236, %237 : vector<8x32xf32>
    %239 = math.tanh %238 : vector<8x32xf32>
    %240 = arith.mulf %235, %239 : vector<8x32xf32>
    %cst_55 = arith.constant dense<0.000000e+00> : vector<8x128xf32>
    %241 = tpu.matmul %224, %7, %cst_55 {dimension_numbers = #tpu.dot_dimension_numbers<[1], [0], [0], [1], [0, 0, 1, 1], [], []>} : vector<8x32xf32>, vector<32x128xf32>, vector<8x128xf32> -> vector<8x128xf32>
    %c48_56 = arith.constant 48 : index
    %c0_57 = arith.constant 0 : index
    %242 = vector.load %arg10[%c48_56, %c0_57] : memref<64x256xf32, #tpu.memory_space<vmem>>, vector<8x128xf32>
    %243 = arith.addf %241, %242 : vector<8x128xf32>
    %cst_58 = arith.constant dense<0.000000e+00> : vector<8x128xf32>
    %244 = tpu.matmul %240, %8, %cst_58 {dimension_numbers = #tpu.dot_dimension_numbers<[1], [0], [0], [1], [0, 0, 1, 1], [], []>} : vector<8x32xf32>, vector<32x128xf32>, vector<8x128xf32> -> vector<8x128xf32>
    %c8_59 = arith.constant 8 : index
    %c128_60 = arith.constant 128 : index
    %245 = vector.load %arg10[%c8_59, %c128_60] : memref<64x256xf32, #tpu.memory_space<vmem>>, vector<8x128xf32>
    %246 = arith.addf %244, %245 : vector<8x128xf32>
    %247 = vector.extract_strided_slice %243 {offsets = [0, 0], sizes = [8, 96], strides = [1, 1]} : vector<8x128xf32> to vector<8x96xf32>
    %248 = arith.negf %247 : vector<8x96xf32>
    %249 = math.exp %248 : vector<8x96xf32>
    %cst_61 = arith.constant 1.000000e+00 : f32
    %250 = vector.broadcast %cst_61 : f32 to vector<8x96xf32>
    %251 = arith.addf %250, %249 : vector<8x96xf32>
    %252 = arith.divf %250, %251 : vector<8x96xf32>
    %253 = vector.extract_strided_slice %243 {offsets = [0, 96], sizes = [8, 32], strides = [1, 1]} : vector<8x128xf32> to vector<8x32xf32>
    %254 = math.tanh %253 : vector<8x32xf32>
    %255 = vector.extract_strided_slice %252 {offsets = [0, 0], sizes = [8, 32], strides = [1, 1]} : vector<8x96xf32> to vector<8x32xf32>
    %256 = vector.extract_strided_slice %252 {offsets = [0, 32], sizes = [8, 32], strides = [1, 1]} : vector<8x96xf32> to vector<8x32xf32>
    %257 = vector.extract_strided_slice %252 {offsets = [0, 64], sizes = [8, 32], strides = [1, 1]} : vector<8x96xf32> to vector<8x32xf32>
    %258 = arith.mulf %256, %222 : vector<8x32xf32>
    %259 = arith.mulf %255, %254 : vector<8x32xf32>
    %260 = arith.addf %258, %259 : vector<8x32xf32>
    %261 = math.tanh %260 : vector<8x32xf32>
    %262 = arith.mulf %257, %261 : vector<8x32xf32>
    %263 = vector.extract_strided_slice %246 {offsets = [0, 0], sizes = [8, 96], strides = [1, 1]} : vector<8x128xf32> to vector<8x96xf32>
    %264 = arith.negf %263 : vector<8x96xf32>
    %265 = math.exp %264 : vector<8x96xf32>
    %cst_62 = arith.constant 1.000000e+00 : f32
    %266 = vector.broadcast %cst_62 : f32 to vector<8x96xf32>
    %267 = arith.addf %266, %265 : vector<8x96xf32>
    %268 = arith.divf %266, %267 : vector<8x96xf32>
    %269 = vector.extract_strided_slice %246 {offsets = [0, 96], sizes = [8, 32], strides = [1, 1]} : vector<8x128xf32> to vector<8x32xf32>
    %270 = math.tanh %269 : vector<8x32xf32>
    %271 = vector.extract_strided_slice %268 {offsets = [0, 0], sizes = [8, 32], strides = [1, 1]} : vector<8x96xf32> to vector<8x32xf32>
    %272 = vector.extract_strided_slice %268 {offsets = [0, 32], sizes = [8, 32], strides = [1, 1]} : vector<8x96xf32> to vector<8x32xf32>
    %273 = vector.extract_strided_slice %268 {offsets = [0, 64], sizes = [8, 32], strides = [1, 1]} : vector<8x96xf32> to vector<8x32xf32>
    %274 = arith.mulf %272, %238 : vector<8x32xf32>
    %275 = arith.mulf %271, %270 : vector<8x32xf32>
    %276 = arith.addf %274, %275 : vector<8x32xf32>
    %277 = math.tanh %276 : vector<8x32xf32>
    %278 = arith.mulf %273, %277 : vector<8x32xf32>
    %cst_63 = arith.constant dense<0.000000e+00> : vector<8x128xf32>
    %279 = tpu.matmul %262, %7, %cst_63 {dimension_numbers = #tpu.dot_dimension_numbers<[1], [0], [0], [1], [0, 0, 1, 1], [], []>} : vector<8x32xf32>, vector<32x128xf32>, vector<8x128xf32> -> vector<8x128xf32>
    %c56_64 = arith.constant 56 : index
    %c0_65 = arith.constant 0 : index
    %280 = vector.load %arg10[%c56_64, %c0_65] : memref<64x256xf32, #tpu.memory_space<vmem>>, vector<8x128xf32>
    %281 = arith.addf %279, %280 : vector<8x128xf32>
    %cst_66 = arith.constant dense<0.000000e+00> : vector<8x128xf32>
    %282 = tpu.matmul %278, %8, %cst_66 {dimension_numbers = #tpu.dot_dimension_numbers<[1], [0], [0], [1], [0, 0, 1, 1], [], []>} : vector<8x32xf32>, vector<32x128xf32>, vector<8x128xf32> -> vector<8x128xf32>
    %c0_67 = arith.constant 0 : index
    %c128_68 = arith.constant 128 : index
    %283 = vector.load %arg10[%c0_67, %c128_68] : memref<64x256xf32, #tpu.memory_space<vmem>>, vector<8x128xf32>
    %284 = arith.addf %282, %283 : vector<8x128xf32>
    %285 = vector.extract_strided_slice %281 {offsets = [0, 0], sizes = [8, 96], strides = [1, 1]} : vector<8x128xf32> to vector<8x96xf32>
    %286 = arith.negf %285 : vector<8x96xf32>
    %287 = math.exp %286 : vector<8x96xf32>
    %cst_69 = arith.constant 1.000000e+00 : f32
    %288 = vector.broadcast %cst_69 : f32 to vector<8x96xf32>
    %289 = arith.addf %288, %287 : vector<8x96xf32>
    %290 = arith.divf %288, %289 : vector<8x96xf32>
    %291 = vector.extract_strided_slice %281 {offsets = [0, 96], sizes = [8, 32], strides = [1, 1]} : vector<8x128xf32> to vector<8x32xf32>
    %292 = math.tanh %291 : vector<8x32xf32>
    %293 = vector.extract_strided_slice %290 {offsets = [0, 0], sizes = [8, 32], strides = [1, 1]} : vector<8x96xf32> to vector<8x32xf32>
    %294 = vector.extract_strided_slice %290 {offsets = [0, 32], sizes = [8, 32], strides = [1, 1]} : vector<8x96xf32> to vector<8x32xf32>
    %295 = vector.extract_strided_slice %290 {offsets = [0, 64], sizes = [8, 32], strides = [1, 1]} : vector<8x96xf32> to vector<8x32xf32>
    %296 = arith.mulf %294, %260 : vector<8x32xf32>
    %297 = arith.mulf %293, %292 : vector<8x32xf32>
    %298 = arith.addf %296, %297 : vector<8x32xf32>
    %299 = math.tanh %298 : vector<8x32xf32>
    %300 = arith.mulf %295, %299 : vector<8x32xf32>
    %301 = vector.extract_strided_slice %284 {offsets = [0, 0], sizes = [8, 96], strides = [1, 1]} : vector<8x128xf32> to vector<8x96xf32>
    %302 = arith.negf %301 : vector<8x96xf32>
    %303 = math.exp %302 : vector<8x96xf32>
    %cst_70 = arith.constant 1.000000e+00 : f32
    %304 = vector.broadcast %cst_70 : f32 to vector<8x96xf32>
    %305 = arith.addf %304, %303 : vector<8x96xf32>
    %306 = arith.divf %304, %305 : vector<8x96xf32>
    %307 = vector.extract_strided_slice %284 {offsets = [0, 96], sizes = [8, 32], strides = [1, 1]} : vector<8x128xf32> to vector<8x32xf32>
    %308 = math.tanh %307 : vector<8x32xf32>
    %309 = vector.extract_strided_slice %306 {offsets = [0, 0], sizes = [8, 32], strides = [1, 1]} : vector<8x96xf32> to vector<8x32xf32>
    %310 = vector.extract_strided_slice %306 {offsets = [0, 32], sizes = [8, 32], strides = [1, 1]} : vector<8x96xf32> to vector<8x32xf32>
    %311 = vector.extract_strided_slice %306 {offsets = [0, 64], sizes = [8, 32], strides = [1, 1]} : vector<8x96xf32> to vector<8x32xf32>
    %312 = arith.mulf %310, %276 : vector<8x32xf32>
    %313 = arith.mulf %309, %308 : vector<8x32xf32>
    %314 = arith.addf %312, %313 : vector<8x32xf32>
    %315 = math.tanh %314 : vector<8x32xf32>
    %316 = arith.mulf %311, %315 : vector<8x32xf32>
    %317 = tpu.concatenate %34, %72, %110, %148, %186, %224, %262, %300 in 0 : vector<8x32xf32>, vector<8x32xf32>, vector<8x32xf32>, vector<8x32xf32>, vector<8x32xf32>, vector<8x32xf32>, vector<8x32xf32>, vector<8x32xf32> -> vector<64x32xf32>
    %318 = tpu.concatenate %316, %278, %240, %202, %164, %126, %88, %50 in 0 : vector<8x32xf32>, vector<8x32xf32>, vector<8x32xf32>, vector<8x32xf32>, vector<8x32xf32>, vector<8x32xf32>, vector<8x32xf32>, vector<8x32xf32> -> vector<64x32xf32>
    %c0_71 = arith.constant 0 : index
    %c0_72 = arith.constant 0 : index
    %319 = vector.load %arg6[%c0_71, %c0_72] : memref<32x128xf32, #tpu.memory_space<vmem>>, vector<32x128xf32>
    %cst_73 = arith.constant dense<0.000000e+00> : vector<64x128xf32>
    %320 = tpu.matmul %317, %319, %cst_73 {dimension_numbers = #tpu.dot_dimension_numbers<[1], [0], [0], [1], [0, 0, 1, 1], [], []>} : vector<64x32xf32>, vector<32x128xf32>, vector<64x128xf32> -> vector<64x128xf32>
    %c0_74 = arith.constant 0 : index
    %c0_75 = arith.constant 0 : index
    %321 = vector.load %arg7[%c0_74, %c0_75] : memref<32x128xf32, #tpu.memory_space<vmem>>, vector<32x128xf32>
    %cst_76 = arith.constant dense<0.000000e+00> : vector<64x128xf32>
    %322 = tpu.matmul %318, %321, %cst_76 {dimension_numbers = #tpu.dot_dimension_numbers<[1], [0], [0], [1], [0, 0, 1, 1], [], []>} : vector<64x32xf32>, vector<32x128xf32>, vector<64x128xf32> -> vector<64x128xf32>
    %323 = arith.addf %320, %322 : vector<64x128xf32>
    %c0_77 = arith.constant 0 : index
    %c0_78 = arith.constant 0 : index
    %324 = vector.load %arg8[%c0_77, %c0_78] : memref<1x128xf32, #tpu.memory_space<vmem>>, vector<1x128xf32>
    %325 = vector.broadcast %324 : vector<1x128xf32> to vector<64x128xf32>
    %326 = arith.addf %323, %325 : vector<64x128xf32>
    %c0_79 = arith.constant 0 : index
    %c0_80 = arith.constant 0 : index
    %327 = vector.load %arg9[%c0_79, %c0_80] : memref<64x128xf32, #tpu.memory_space<vmem>>, vector<64x128xf32>
    tpu.vector_store %arg9[%c0_79, %c0_80], %326 {strides = array<i32>} : memref<64x128xf32, #tpu.memory_space<vmem>>, vector<64x128xf32>,
    return
  }
  func.func @transform_0(%arg0: i32) -> (i32, i32) {
    %c0_i32 = arith.constant 0 : i32
    %c0_i32_0 = arith.constant 0 : i32
    %c0_i32_1 = arith.constant 0 : i32
    return %c0_i32, %c0_i32_0 : i32, i32
  }
  func.func @transform_1(%arg0: i32) -> (i32, i32) {
    %c0_i32 = arith.constant 0 : i32
    %c0_i32_0 = arith.constant 0 : i32
    %c0_i32_1 = arith.constant 0 : i32
    return %c0_i32, %c0_i32_0 : i32, i32
  }
  func.func @transform_2(%arg0: i32) -> (i32, i32) {
    %c0_i32 = arith.constant 0 : i32
    %c0_i32_0 = arith.constant 0 : i32
    %c0_i32_1 = arith.constant 0 : i32
    return %c0_i32, %c0_i32_0 : i32, i32
  }
  func.func @transform_3(%arg0: i32) -> (i32, i32) {
    %c0_i32 = arith.constant 0 : i32
    %c0_i32_0 = arith.constant 0 : i32
    %c0_i32_1 = arith.constant 0 : i32
    return %c0_i32, %c0_i32_0 : i32, i32
  }
  func.func @transform_4(%arg0: i32) -> (i32, i32) {
    %c0_i32 = arith.constant 0 : i32
    %c0_i32_0 = arith.constant 0 : i32
    %c0_i32_1 = arith.constant 0 : i32
    return %c0_i32, %c0_i32_0 : i32, i32
  }
  func.func @transform_5(%arg0: i32) -> (i32, i32) {
    %c0_i32 = arith.constant 0 : i32
    %c0_i32_0 = arith.constant 0 : i32
    %c0_i32_1 = arith.constant 0 : i32
    return %c0_i32, %c0_i32_0 : i32, i32
  }
  func.func @transform_6(%arg0: i32) -> (i32, i32) {
    %c0_i32 = arith.constant 0 : i32
    %c0_i32_0 = arith.constant 0 : i32
    %c0_i32_1 = arith.constant 0 : i32
    return %c0_i32, %c0_i32_0 : i32, i32
  }
  func.func @transform_7(%arg0: i32) -> (i32, i32) {
    %c0_i32 = arith.constant 0 : i32
    %c0_i32_0 = arith.constant 0 : i32
    %c0_i32_1 = arith.constant 0 : i32
    return %c0_i32, %c0_i32_0 : i32, i32
  }
  func.func @transform_8(%arg0: i32) -> (i32, i32) {
    %c0_i32 = arith.constant 0 : i32
    %c0_i32_0 = arith.constant 0 : i32
    %c0_i32_1 = arith.constant 0 : i32
    return %c0_i32, %c0_i32_0 : i32, i32
  }
}

</mosaic_0001>

<bundles_post_ra>
// kernel: bidirectional_lstm_forward.1
= control target key start
LH: loop header
LB: loop body
LE: loop exit
PB: predicated region body
PF: predicated region fallthrough
CT: control target
= control target key end

     0   :  { %v2698_v3 = vmov 0.0   ;;  %vm53_vm0 = vcmask 130048   ;;  %v2699_v12 = vmov 0.0|0.0   ;;  %vm2700_vm1 = vmmov 0   ;;  %s2702_s18 = smov 64   ;;  %s3206_s1 = inlined_call_operand.vmem [shape: f32[16,256], index: 1, kind: input, shape index: {}]   ;;  %s3207_s2 = inlined_call_operand.vmem [shape: f32[32,128], index: 2, kind: input, shape index: {}]   ;;  %s3208_s0 = inlined_call_operand.vmem [shape: f32[64,16], index: 0, kind: input, shape index: {}]   ;;  %s3209_s3 = inlined_call_operand.vmem [shape: f32[32,128], index: 3, kind: input, shape index: {}]   ;;  %s3210_s4 = inlined_call_operand.vmem [shape: f32[1,256], index: 4, kind: input, shape index: {}]   ;;  %s3211_s6 = inlined_call_operand.vmem [shape: f32[32,128], index: 6, kind: input, shape index: {}]   ;;  %s3212_s5 = inlined_call_operand.vmem [shape: f32[32,128], index: 5, kind: input, shape index: {}]   ;;  %s3213_s7 = inlined_call_operand.vmem [shape: f32[1,128], index: 7, kind: input, shape index: {}]   ;;  %s3214_s8 = inlined_call_operand.vmem [shape: f32[64,128], index: 8, kind: output, shape index: {}]  }
   0x1   :  { %v38_v0 = vld [vmem:[%s3206_s1 + $0x8] sm:$0xff]  ;;  %v40_v1 = vld [vmem:[%s3206_s1 + $0x18] sm:$0xff]  ;;  %v37_v2 = vld [vmem:[%s3206_s1] sm:$0xff]  ;;  %166 = vmatprep.mubr.f32.mxu1 %v2698_v3  ;;  %142 = vmatprep.mubr.f32.mxu0 %v2698_v3  ;;  %v43_v25 = vlaneseq  ;;  %vm216_vm2 = vcmask 261120  }
   0x2   :  { %v2439_v4 = vpack.c.bf16 %v40_v1, %v38_v0  ;;  %v39_v5 = vld [vmem:[%s3206_s1 + $0x10] sm:$0xff]  ;;  %v207_v6 = vld [vmem:[%s3207_s2] sm:$0xff]  ;;  %v208_v8 = vld [vmem:[%s3207_s2 + $0x8] sm:$0xff] }
   0x3   :  { %v2441_v7 = vpack.c.bf16 %v39_v5, %v37_v2  ;;  %v33_v9 = vld [vmem:[%s3208_s0 + $0x20] sm:$0xff]  ;;  %v2771_v10 = vpack.c.bf16 %v208_v8, %v207_v6  ;;  %v209_v13 = vld [vmem:[%s3207_s2 + $0x10] sm:$0xff]  ;;  %v210_v14 = vld [vmem:[%s3207_s2 + $0x18] sm:$0xff]  ;;  %v44_v30 = vshrl.u32 %v43_v25, 7 }
   0x4   :  { %2555 = vmatprep.subr.bf16.mxu1 %v2439_v4  ;;  %2440 = vmatprep.subr.bf16.mxu0 %v2439_v4  ;;  %v29_v11 = vld [vmem:[%s3208_s0] sm:$0xff]  ;;  %v34_v15 = vld [vmem:[%s3208_s0 + $0x28] sm:$0xff]  ;;  %v2791_v16 = vpack.c.bf16 %v210_v14, %v209_v13  ;;  %v35_v17 = vld [vmem:[%s3208_s0 + $0x30] sm:$0xff] }
   0x5   :  { %2556 = vmatpush1.bf16.msra.mxu1 %v2441_v7  ;;  %2442 = vmatpush1.bf16.msra.mxu0 %v2441_v7  ;;  %v36_v18 = vld [vmem:[%s3208_s0 + $0x38] sm:$0xff]  ;;  %v211_v19 = vld [vmem:[%s3209_s3] sm:$0xff]  ;;  %v212_v20 = vld [vmem:[%s3209_s3 + $0x8] sm:$0xff]  ;;  %v45_v33 = vsub.s32 0, %v44_v30  ;;  %v49_v42 = vsub.s32 1, %v44_v30 }
   0x6   :  { %2443 = vmatprep.subr.bf16.mxu1 %v2699_v12  ;;  %2467 = vmatprep.subr.bf16.mxu0 %v2699_v12  ;;  %v2820_v21 = vpack.c.bf16 %v212_v20, %v211_v19  ;;  %v213_v22 = vld [vmem:[%s3209_s3 + $0x10] sm:$0xff]  ;;  %v214_v23 = vld [vmem:[%s3209_s3 + $0x18] sm:$0xff]  ;;  %v41_v34 = vld [vmem:[%s3210_s4] sm:$0x3]  ;;  %s2701_s4 = smov 32  }
   0x7   :  { %v2830_v24 = vpack.c.bf16 %v214_v23, %v213_v22  ;;  %v2861_v37 = vrot.slane %v41_v34, %v45_v33  ;;  %v2866_v45 = vrot.slane %v41_v34, %v49_v42  ;;  %v30_v7 = vld [vmem:[%s3208_s0 + $0x8] sm:$0xff] }
   0x8   :  { %2068 = vmatmul.mubr.msk.f32.vlgmr.msra.gmra.mrb[0].mxu1 %vm53_vm0, %v33_v9  ;;  %2064 = vmatmul.mubr.msk.f32.vlgmr.msra.gmra.mrb[0].mxu0 %vm53_vm0, %v29_v11 }
   0x9   :  { %2445 = vmatpush3.bf16.msra.mxu1 %v2771_v10  ;;  %172 = vmatprep.mubr.f32.mxu1 %v2698_v3 }
   0xa   :  { %2446 = vmatprep.subr.bf16.mxu1 %v2699_v12  ;;  %148 = vmatprep.mubr.f32.mxu0 %v2698_v3 }
   0xb   :  { %2469 = vmatpush3.bf16.msra.mxu0 %v2771_v10 }
   0xc   :  { %2069 = vmatmul.mubr.msk.f32.gmra.mrb[2].mxu1 %vm53_vm0, %v34_v15  ;;  %2470 = vmatprep.subr.bf16.mxu0 %v2699_v12 }
   0xd   :  { %178 = vmatprep.mubr.f32.mxu1 %v2698_v3  ;;  %2448 = vmatpush3.bf16.msra.mxu1 %v2791_v16 }
   0xe   :  { %2449 = vmatprep.subr.bf16.mxu1 %v2699_v12  ;;  %2065 = vmatmul.mubr.msk.f32.gmra.mrb[2].mxu0 %vm53_vm0, %v30_v7 }
   0xf   :  { %2472 = vmatpush3.bf16.msra.mxu0 %v2791_v16  ;;  %154 = vmatprep.mubr.f32.mxu0 %v2698_v3 }
  0x10   :  { %2070 = vmatmul.mubr.msk.f32.gmra.mrb[4].mxu1 %vm53_vm0, %v35_v17  ;;  %2479 = vmatprep.subr.bf16.mxu0 %v2699_v12 }
  0x11   :  { %184 = vmatprep.mubr.f32.mxu1 %v2698_v3 }
  0x14   :  { %2071 = vmatmul.mubr.msk.f32.gmra.mrb[6].mxu1 %vm53_vm0, %v36_v18 }
  0x15   :  { %2231 = vmatprep.mubr.msk.f32.mxu1 %vm2700_vm1, %v2698_v3 }
  0x18   :  { %2232 = vmatmul.mubr.f32.vlgmr.msra.gmra.mrb[8].mxu1 %v2698_v3 }
  0x19   :  { %2451 = vmatpush3.bf16.msra.mxu1 %v2820_v21  ;;  %2242 = vmatprep.mubr.msk.f32.mxu1 %vm2700_vm1, %v2698_v3 }
  0x1a   :  { %2452 = vmatprep.subr.bf16.mxu1 %v2699_v12 }
  0x1d   :  { %2454 = vmatpush3.bf16.msra.mxu1 %v2830_v24 }
  0x1e   :  { %2455 = vmatprep.subr.bf16.mxu1 %v2699_v12 }
  0x20   :  { %2243 = vmatmul.mubr.f32.vlgmr.msra.gmra.mrb[10].mxu1 %v2698_v3 }
  0x21   :  { %2457 = vmatpush3.bf16.msra.mxu1 %v2771_v10  ;;  %2253 = vmatprep.mubr.msk.f32.mxu1 %vm2700_vm1, %v2698_v3 }
  0x22   :  { %2458 = vmatprep.subr.bf16.mxu1 %v2699_v12 }
  0x25   :  { %2460 = vmatpush3.bf16.msra.mxu1 %v2791_v16 }
  0x26   :  { %2461 = vmatprep.subr.bf16.mxu1 %v2699_v12 }
  0xdb   :  { %v2844_v26 = vpop.f32.mrb[0].mxu1  ;;  %v144_v27 = vpop.f32.mrb[0].mxu0 }
  0xdc   :  { %v2846_v28 = vpop.f32.mrb[1].mxu1  ;;  %v2848_v29 = vpop.f32.mrb[1].mxu0  ;;  %v145_v40 = vadd.f32 %v144_v27, %v2861_v37 }
  0xdf   :  { %v2850_v31 = vpop.f32.mrb[2].mxu1 }
  0xe0   :  { %v2852_v32 = vpop.f32.mrb[3].mxu1 }
  0xe1   :  { %v150_v17 = vpop.f32.mrb[2].mxu0 }
  0xe2   :  { %v2908_v20 = vpop.f32.mrb[3].mxu0  ;;  %v151_v22 = vadd.f32 %v150_v17, %v2861_v37 }
  0xe3   :  { %v2857_v35 = vpop.f32.mrb[4].mxu1 }
  0xe4   :  { %v2859_v36 = vpop.f32.mrb[5].mxu1 }
  0xe5   :  { %v183_v30 = vadd.f32 %v2859_v36, %v2866_v45 }
  0xe7   :  { %v2863_v38 = vpop.f32.mrb[6].mxu1 }
  0xe8   :  { %v188_v39 = vpop.f32.mrb[7].mxu1 }
  0xe9   :  { %v189_v46 = vadd.f32 %v188_v39, %v2866_v45 }
  0xeb   :  { %v286_v41 = vpop.f32.mrb[8].mxu1 }
  0xec   :  { %v287_v43 = vadd.f32 %v286_v41, %v145_v40  ;;  %v2233_v44 = vpop.f32.mrb[9].mxu1 }
  0xee   :  { %2570 = vtanh.f32 %v287_v43  ;;  %v2072_v52 = vmul.f32 -1.442695, %v287_v43 }
  0xf3   :  { %v357_v47 = vpop.f32.mrb[10].mxu1 }
  0xf4   :  { %v358_v48 = vadd.f32 %v357_v47, %v189_v46  ;;  %v2244_v49 = vpop.f32.mrb[11].mxu1 }
  0xf6   :  { %2572 = vtanh.f32 %v358_v48  ;;  %v2073_v53 = vmul.f32 -1.442695, %v358_v48 }
  0xf7   :  { %2574 = vpow2.f32 %v2072_v52 }
  0xf8   :  { %v2571_v50 = vpop.eup %2570  ;;  %2576 = vpow2.f32 %v2073_v53 }
  0xf9   :  { %370 = vrot.lane.b32.xlu0 %v2571_v50, %s2701_s4 }
 0x100   :  { %v2573_v51 = vpop.eup %2572 }
 0x101   :  { %394 = vrot.lane.b32.xlu0 %v2573_v51, %s2701_s4  ;;  %v2575_v54 = vpop.eup %2574 }
 0x102   :  { %v364_v55 = vadd.f32 1.0, %v2575_v54  ;;  %v2577_v56 = vpop.eup %2576 }
 0x103   :  { %v388_v57 = vadd.f32 1.0, %v2577_v56 }
 0x104   :  { %2578 = vrcp.f32 %v364_v55 }
 0x105   :  { %2580 = vrcp.f32 %v388_v57 }
 0x10e   :  { %v2579_v58 = vpop.eup %2578 }
 0x10f   :  { %v2581_v61 = vpop.eup %2580  ;;  %v368_v0 = vmul.f32 0.0, %v2579_v58 }
 0x110   :  { %v392_v4 = vmul.f32 0.0, %v2581_v61 }
 0x16b   :  { %v371_v59 = vpop.permute.xlu0 %370 }
 0x16c   :  { %v373_v60 = vmul.f32 %v2579_v58, %v371_v59 }
 0x16e   :  { %375 = vrot.lane.b32.xlu1 %v373_v60, %s2701_s4  ;;  %v31_v60 = vld [vmem:[%s3208_s0 + $0x10] sm:$0xff] }
 0x16f   :  { %2066 = vmatmul.mubr.msk.f32.gmra.mrb[4].mxu0 %vm53_vm0, %v31_v60 }
 0x170   :  { %160 = vmatprep.mubr.f32.mxu0 %v2698_v3 }
 0x173   :  { %v395_v62 = vpop.permute.xlu0 %394 }
 0x174   :  { %v397_v63 = vmul.f32 %v2581_v61, %v395_v62  ;;  %v32_v62 = vld [vmem:[%s3208_s0 + $0x18] sm:$0xff] }
 0x175   :  { %2067 = vmatmul.mubr.msk.f32.gmra.mrb[6].mxu0 %vm53_vm0, %v32_v62 }
 0x176   :  { %399 = vrot.lane.b32.xlu1 %v397_v63, %s2701_s4  ;;  %2275 = vmatprep.mubr.msk.f32.mxu0 %vm2700_vm1, %v2698_v3 }
 0x1e0   :  { %v376_v1 = vpop.permute.xlu1 %375 }
 0x1e1   :  { %v2873_v2 = vadd.f32 %v376_v1, %v368_v0 }
 0x1e3   :  { %2582 = vtanh.f32 %v2873_v2 }
 0x1e8   :  { %v400_v5 = vpop.permute.xlu1 %399 }
 0x1e9   :  { %v2876_v6 = vadd.f32 %v400_v5, %v392_v4 }
 0x1eb   :  { %2584 = vtanh.f32 %v2876_v6 }
 0x1ed   :  { %v2583_v8 = vpop.eup %2582 }
 0x1ee   :  { %381 = vrot.lane.b32.xlu0 %v2583_v8, %s2701_s4 }
 0x1f5   :  { %v2585_v9 = vpop.eup %2584 }
 0x1f6   :  { %405 = vrot.lane.b32.xlu1 %v2585_v9, %s2701_s4 }
 0x242   :  { %v156_v5 = vpop.f32.mrb[4].mxu0 }
 0x260   :  { %v382_v11 = vpop.permute.xlu0 %381 }
 0x261   :  { %v384_v13 = vmul.f32 %v2579_v58, %v382_v11 }
 0x263   :  { %411 = vrot.lane.b32.xlu0 %v384_v13, %s2702_s18  ;;  %v157_v13 = vadd.f32 %v156_v5, %v2861_v37 }
 0x268   :  { %v406_v14 = vpop.permute.xlu1 %405 }
 0x269   :  { %v408_v15 = vmul.f32 %v2581_v61, %v406_v14 }
 0x26b   :  { %487 = vrot.lane.b32.xlu1 %v408_v15, %s2702_s18 }
 0x2d5   :  { %v2888_v18 = vpop.permute.xlu0 %411 }
 0x2d6   :  { %2254 = vmatmul.mubr.msk.f32.vlgmr.msra.gmra.mrb[12].mxu1 %vm216_vm2, %v2888_v18 }
 0x2d7   :  { %2463 = vmatpush3.bf16.msra.mxu1 %v2820_v21  ;;  %2264 = vmatprep.mubr.msk.f32.mxu1 %vm2700_vm1, %v2698_v3 }
 0x2d8   :  { %2464 = vmatprep.subr.bf16.mxu1 %v2699_v12 }
 0x2db   :  { %2466 = vmatpush3.bf16.msra.mxu1 %v2830_v24 }
 0x2dc   :  { %2473 = vmatprep.subr.bf16.mxu1 %v2699_v12 }
 0x2dd   :  { %v2898_v19 = vpop.permute.xlu1 %487 }
 0x2de   :  { %2265 = vmatmul.mubr.msk.f32.vlgmr.msra.gmra.mrb[14].mxu1 %vm216_vm2, %v2898_v19 }
 0x2df   :  { %2475 = vmatpush3.bf16.msra.mxu1 %v2820_v21  ;;  %2286 = vmatprep.mubr.msk.f32.mxu1 %vm2700_vm1, %v2698_v3 }
 0x2e0   :  { %2476 = vmatprep.subr.bf16.mxu1 %v2699_v12 }
 0x2e3   :  { %2478 = vmatpush3.bf16.msra.mxu1 %v2830_v24 }
 0x2e4   :  { %2485 = vmatprep.subr.bf16.mxu1 %v2699_v12 }
 0x3a9   :  { %v481_v23 = vpop.f32.mrb[12].mxu1 }
 0x3aa   :  { %v482_v25 = vadd.f32 %v481_v23, %v151_v22  ;;  %v2255_v27 = vpop.f32.mrb[13].mxu1  ;;  %v177_v22 = vadd.f32 %v2852_v32, %v2866_v45 }
 0x3ac   :  { %2586 = vtanh.f32 %v482_v25  ;;  %v2076_v42 = vmul.f32 -1.442695, %v482_v25 }
 0x3b1   :  { %v557_v33 = vpop.f32.mrb[14].mxu1 }
 0x3b2   :  { %v558_v34 = vadd.f32 %v557_v33, %v183_v30  ;;  %v2266_v39 = vpop.f32.mrb[15].mxu1 }
 0x3b4   :  { %2588 = vtanh.f32 %v558_v34  ;;  %v2077_v43 = vmul.f32 -1.442695, %v558_v34 }
 0x3b5   :  { %2590 = vpow2.f32 %v2076_v42 }
 0x3b6   :  { %v2587_v40 = vpop.eup %2586  ;;  %2592 = vpow2.f32 %v2077_v43 }
 0x3b7   :  { %570 = vrot.lane.b32.xlu1 %v2587_v40, %s2701_s4 }
 0x3be   :  { %v2589_v41 = vpop.eup %2588 }
 0x3bf   :  { %594 = vrot.lane.b32.xlu0 %v2589_v41, %s2701_s4  ;;  %v2591_v44 = vpop.eup %2590 }
 0x3c0   :  { %v564_v46 = vadd.f32 1.0, %v2591_v44  ;;  %v2593_v47 = vpop.eup %2592 }
 0x3c1   :  { %v588_v48 = vadd.f32 1.0, %v2593_v47 }
 0x3c2   :  { %2594 = vrcp.f32 %v564_v46 }
 0x3c3   :  { %2596 = vrcp.f32 %v588_v48 }
 0x3cc   :  { %v2595_v36 = vpop.eup %2594 }
 0x3cd   :  { %v2597_v51 = vpop.eup %2596  ;;  %v568_v54 = vmul.f32 %v2595_v36, %v2873_v2 }
 0x3ce   :  { %v592_v57 = vmul.f32 %v2597_v51, %v2876_v6  ;;  %v2940_v6 = vpop.f32.mrb[5].mxu0 }
 0x3cf   :  { %v2942_v7 = vpop.f32.mrb[6].mxu0 }
 0x3d0   :  { %v2944_v8 = vpop.f32.mrb[7].mxu0 }
 0x429   :  { %v571_v49 = vpop.permute.xlu1 %570 }
 0x42a   :  { %v573_v50 = vmul.f32 %v2595_v36, %v571_v49 }
 0x42c   :  { %575 = vrot.lane.b32.xlu1 %v573_v50, %s2701_s4 }
 0x431   :  { %v595_v52 = vpop.permute.xlu0 %594 }
 0x432   :  { %v597_v53 = vmul.f32 %v2597_v51, %v595_v52 }
 0x434   :  { %599 = vrot.lane.b32.xlu0 %v597_v53, %s2701_s4 }
 0x49e   :  { %v576_v55 = vpop.permute.xlu1 %575 }
 0x49f   :  { %v2918_v56 = vadd.f32 %v576_v55, %v568_v54 }
 0x4a1   :  { %2598 = vtanh.f32 %v2918_v56 }
 0x4a6   :  { %v600_v58 = vpop.permute.xlu0 %599 }
 0x4a7   :  { %v2922_v59 = vadd.f32 %v600_v58, %v592_v57 }
 0x4a9   :  { %2600 = vtanh.f32 %v2922_v59 }
 0x4ab   :  { %v2599_v61 = vpop.eup %2598 }
 0x4ac   :  { %581 = vrot.lane.b32.xlu1 %v2599_v61, %s2701_s4 }
 0x4b3   :  { %v2601_v63 = vpop.eup %2600 }
 0x4b4   :  { %605 = vrot.lane.b32.xlu0 %v2601_v63, %s2701_s4  ;;  %v163_v63 = vadd.f32 %v2942_v7, %v2861_v37 }
 0x51e   :  { %v582_v0 = vpop.permute.xlu1 %581 }
 0x51f   :  { %v584_v1 = vmul.f32 %v2595_v36, %v582_v0 }
 0x521   :  { %611 = vrot.lane.b32.xlu1 %v584_v1, %s2702_s18 }
 0x526   :  { %v606_v2 = vpop.permute.xlu0 %605 }
 0x527   :  { %v608_v4 = vmul.f32 %v2597_v51, %v606_v2 }
 0x529   :  { %687 = vrot.lane.b32.xlu0 %v608_v4, %s2702_s18  ;;  %v171_v4 = vadd.f32 %v2846_v28, %v2866_v45 }
 0x593   :  { %v2946_v9 = vpop.permute.xlu1 %611 }
 0x594   :  { %2276 = vmatmul.mubr.msk.f32.vlgmr.msra.gmra.mrb[8].mxu0 %vm216_vm2, %v2946_v9 }
 0x595   :  { %2481 = vmatpush3.bf16.msra.mxu0 %v2771_v10  ;;  %2297 = vmatprep.mubr.msk.f32.mxu0 %vm2700_vm1, %v2698_v3 }
 0x596   :  { %2482 = vmatprep.subr.bf16.mxu0 %v2699_v12 }
 0x599   :  { %2484 = vmatpush3.bf16.msra.mxu0 %v2791_v16 }
 0x59a   :  { %2491 = vmatprep.subr.bf16.mxu0 %v2699_v12 }
 0x59b   :  { %v2956_v11 = vpop.permute.xlu0 %687 }
 0x59c   :  { %2287 = vmatmul.mubr.msk.f32.vlgmr.msra.gmra.mrb[16].mxu1 %vm216_vm2, %v2956_v11 }
 0x59d   :  { %2487 = vmatpush3.bf16.msra.mxu1 %v2820_v21  ;;  %2308 = vmatprep.mubr.msk.f32.mxu1 %vm2700_vm1, %v2698_v3 }
 0x59e   :  { %2488 = vmatprep.subr.bf16.mxu1 %v2699_v12 }
 0x5a1   :  { %2490 = vmatpush3.bf16.msra.mxu1 %v2830_v24 }
 0x5a2   :  { %2497 = vmatprep.subr.bf16.mxu1 %v2699_v12 }
 0x667   :  { %v681_v14 = vpop.f32.mrb[8].mxu0 }
 0x668   :  { %v682_v15 = vadd.f32 %v681_v14, %v157_v13  ;;  %v2277_v17 = vpop.f32.mrb[9].mxu0 }
 0x66a   :  { %2602 = vtanh.f32 %v682_v15  ;;  %v2080_v34 = vmul.f32 -1.442695, %v682_v15 }
 0x66f   :  { %v757_v23 = vpop.f32.mrb[16].mxu1 }
 0x670   :  { %v758_v25 = vadd.f32 %v757_v23, %v177_v22  ;;  %v2288_v27 = vpop.f32.mrb[17].mxu1 }
 0x672   :  { %2604 = vtanh.f32 %v758_v25  ;;  %v2081_v39 = vmul.f32 -1.442695, %v758_v25 }
 0x673   :  { %2606 = vpow2.f32 %v2080_v34 }
 0x674   :  { %v2603_v30 = vpop.eup %2602  ;;  %2608 = vpow2.f32 %v2081_v39 }
 0x675   :  { %770 = vrot.lane.b32.xlu1 %v2603_v30, %s2701_s4 }
 0x67c   :  { %v2605_v33 = vpop.eup %2604 }
 0x67d   :  { %794 = vrot.lane.b32.xlu0 %v2605_v33, %s2701_s4  ;;  %v2607_v40 = vpop.eup %2606 }
 0x67e   :  { %v764_v41 = vadd.f32 1.0, %v2607_v40  ;;  %v2609_v42 = vpop.eup %2608 }
 0x67f   :  { %v788_v43 = vadd.f32 1.0, %v2609_v42 }
 0x680   :  { %2610 = vrcp.f32 %v764_v41 }
 0x681   :  { %2612 = vrcp.f32 %v788_v43 }
 0x68a   :  { %v2611_v32 = vpop.eup %2610 }
 0x68b   :  { %v2613_v47 = vpop.eup %2612  ;;  %v768_v49 = vmul.f32 %v2611_v32, %v2918_v56 }
 0x68c   :  { %v792_v52 = vmul.f32 %v2613_v47, %v2922_v59 }
 0x6e7   :  { %v771_v44 = vpop.permute.xlu1 %770 }
 0x6e8   :  { %v773_v46 = vmul.f32 %v2611_v32, %v771_v44 }
 0x6ea   :  { %775 = vrot.lane.b32.xlu1 %v773_v46, %s2701_s4 }
 0x6ef   :  { %v795_v48 = vpop.permute.xlu0 %794 }
 0x6f0   :  { %v797_v36 = vmul.f32 %v2613_v47, %v795_v48 }
 0x6f2   :  { %799 = vrot.lane.b32.xlu0 %v797_v36, %s2701_s4 }
 0x75c   :  { %v776_v50 = vpop.permute.xlu1 %775 }
 0x75d   :  { %v778_v51 = vadd.f32 %v776_v50, %v768_v49 }
 0x75f   :  { %2614 = vtanh.f32 %v778_v51 }
 0x764   :  { %v800_v53 = vpop.permute.xlu0 %799 }
 0x765   :  { %v802_v54 = vadd.f32 %v800_v53, %v792_v52 }
 0x767   :  { %2616 = vtanh.f32 %v802_v54 }
 0x769   :  { %v2615_v55 = vpop.eup %2614 }
 0x76a   :  { %781 = vrot.lane.b32.xlu1 %v2615_v55, %s2701_s4  ;;  %v169_v55 = vadd.f32 %v2844_v26, %v2861_v37 }
 0x771   :  { %v2617_v57 = vpop.eup %2616 }
 0x772   :  { %805 = vrot.lane.b32.xlu0 %v2617_v57, %s2701_s4 }
 0x7dc   :  { %v782_v58 = vpop.permute.xlu1 %781 }
 0x7dd   :  { %v784_v60 = vmul.f32 %v2611_v32, %v782_v58 }
 0x7df   :  { %811 = vrot.lane.b32.xlu1 %v784_v60, %s2702_s18 }
 0x7e4   :  { %v806_v61 = vpop.permute.xlu0 %805 }
 0x7e5   :  { %v808_v56 = vmul.f32 %v2613_v47, %v806_v61  ;;  %v165_v61 = vadd.f32 %v2944_v8, %v2866_v45 }
 0x7e7   :  { %887 = vrot.lane.b32.xlu0 %v808_v56, %s2702_s18 }
 0x851   :  { %v2979_v62 = vpop.permute.xlu1 %811 }
 0x852   :  { %2298 = vmatmul.mubr.msk.f32.vlgmr.msra.gmra.mrb[10].mxu0 %vm216_vm2, %v2979_v62 }
 0x853   :  { %2493 = vmatpush3.bf16.msra.mxu0 %v2771_v10  ;;  %2319 = vmatprep.mubr.msk.f32.mxu0 %vm2700_vm1, %v2698_v3 }
 0x854   :  { %2494 = vmatprep.subr.bf16.mxu0 %v2699_v12 }
 0x857   :  { %2496 = vmatpush3.bf16.msra.mxu0 %v2791_v16 }
 0x858   :  { %2503 = vmatprep.subr.bf16.mxu0 %v2699_v12 }
 0x859   :  { %v2989_v59 = vpop.permute.xlu0 %887 }
 0x85a   :  { %2309 = vmatmul.mubr.msk.f32.vlgmr.msra.gmra.mrb[18].mxu1 %vm216_vm2, %v2989_v59 }
 0x85b   :  { %2499 = vmatpush3.bf16.msra.mxu1 %v2820_v21  ;;  %2330 = vmatprep.mubr.msk.f32.mxu1 %vm2700_vm1, %v2698_v3 }
 0x85c   :  { %2500 = vmatprep.subr.bf16.mxu1 %v2699_v12 }
 0x85f   :  { %2502 = vmatpush3.bf16.msra.mxu1 %v2830_v24 }
 0x860   :  { %2509 = vmatprep.subr.bf16.mxu1 %v2699_v12 }
 0x925   :  { %v881_v0 = vpop.f32.mrb[10].mxu0 }
 0x926   :  { %v882_v1 = vadd.f32 %v881_v0, %v163_v63  ;;  %v2299_v2 = vpop.f32.mrb[11].mxu0 }
 0x928   :  { %2618 = vtanh.f32 %v882_v1  ;;  %v2084_v22 = vmul.f32 -1.442695, %v882_v1 }
 0x92d   :  { %v957_v5 = vpop.f32.mrb[18].mxu1 }
 0x92e   :  { %v958_v13 = vadd.f32 %v957_v5, %v171_v4  ;;  %v2310_v14 = vpop.f32.mrb[19].mxu1 }
 0x930   :  { %2620 = vtanh.f32 %v958_v13  ;;  %v2085_v7 = vmul.f32 -1.442695, %v958_v13 }
 0x931   :  { %2622 = vpow2.f32 %v2084_v22 }
 0x932   :  { %v2619_v15 = vpop.eup %2618  ;;  %2624 = vpow2.f32 %v2085_v7 }
 0x933   :  { %970 = vrot.lane.b32.xlu1 %v2619_v15, %s2701_s4 }
 0x93a   :  { %v2621_v17 = vpop.eup %2620 }
 0x93b   :  { %994 = vrot.lane.b32.xlu0 %v2621_v17, %s2701_s4  ;;  %v2623_v23 = vpop.eup %2622 }
 0x93c   :  { %v964_v25 = vadd.f32 1.0, %v2623_v23  ;;  %v2625_v27 = vpop.eup %2624 }
 0x93d   :  { %v988_v30 = vadd.f32 1.0, %v2625_v27 }
 0x93e   :  { %2626 = vrcp.f32 %v964_v25 }
 0x93f   :  { %2628 = vrcp.f32 %v988_v30 }
 0x948   :  { %v2627_v28 = vpop.eup %2626 }
 0x949   :  { %v2629_v39 = vpop.eup %2628  ;;  %v968_v42 = vmul.f32 %v2627_v28, %v778_v51 }
 0x94a   :  { %v992_v44 = vmul.f32 %v2629_v39, %v802_v54 }
 0x9a5   :  { %v971_v33 = vpop.permute.xlu1 %970 }
 0x9a6   :  { %v973_v34 = vmul.f32 %v2627_v28, %v971_v33 }
 0x9a8   :  { %975 = vrot.lane.b32.xlu1 %v973_v34, %s2701_s4 }
 0x9ad   :  { %v995_v40 = vpop.permute.xlu0 %994 }
 0x9ae   :  { %v997_v41 = vmul.f32 %v2629_v39, %v995_v40 }
 0x9b0   :  { %999 = vrot.lane.b32.xlu0 %v997_v41, %s2701_s4 }
 0xa1a   :  { %v976_v43 = vpop.permute.xlu1 %975 }
 0xa1b   :  { %v978_v32 = vadd.f32 %v976_v43, %v968_v42 }
 0xa1d   :  { %2630 = vtanh.f32 %v978_v32 }
 0xa22   :  { %v1000_v46 = vpop.permute.xlu0 %999 }
 0xa23   :  { %v1002_v47 = vadd.f32 %v1000_v46, %v992_v44 }
 0xa25   :  { %2632 = vtanh.f32 %v1002_v47 }
 0xa27   :  { %v2631_v48 = vpop.eup %2630 }
 0xa28   :  { %981 = vrot.lane.b32.xlu1 %v2631_v48, %s2701_s4  ;;  %v175_v48 = vadd.f32 %v2850_v31, %v2861_v37 }
 0xa2f   :  { %v2633_v36 = vpop.eup %2632 }
 0xa30   :  { %1005 = vrot.lane.b32.xlu0 %v2633_v36, %s2701_s4 }
 0xa9a   :  { %v982_v49 = vpop.permute.xlu1 %981 }
 0xa9b   :  { %v984_v50 = vmul.f32 %v2627_v28, %v982_v49 }
 0xa9d   :  { %1011 = vrot.lane.b32.xlu1 %v984_v50, %s2702_s18 }
 0xaa2   :  { %v1006_v52 = vpop.permute.xlu0 %1005 }
 0xaa3   :  { %v1008_v53 = vmul.f32 %v2629_v39, %v1006_v52  ;;  %v159_v52 = vadd.f32 %v2940_v6, %v2866_v45 }
 0xaa5   :  { %1087 = vrot.lane.b32.xlu0 %v1008_v53, %s2702_s18 }
 0xb0f   :  { %v3011_v51 = vpop.permute.xlu1 %1011 }
 0xb10   :  { %2320 = vmatmul.mubr.msk.f32.vlgmr.msra.gmra.mrb[12].mxu0 %vm216_vm2, %v3011_v51 }
 0xb11   :  { %2505 = vmatpush3.bf16.msra.mxu0 %v2771_v10  ;;  %2341 = vmatprep.mubr.msk.f32.mxu0 %vm2700_vm1, %v2698_v3 }
 0xb12   :  { %2506 = vmatprep.subr.bf16.mxu0 %v2699_v12 }
 0xb15   :  { %2508 = vmatpush3.bf16.msra.mxu0 %v2791_v16 }
 0xb16   :  { %2515 = vmatprep.subr.bf16.mxu0 %v2699_v12 }
 0xb17   :  { %v3021_v54 = vpop.permute.xlu0 %1087 }
 0xb18   :  { %2331 = vmatmul.mubr.msk.f32.vlgmr.msra.gmra.mrb[20].mxu1 %vm216_vm2, %v3021_v54 }
 0xb19   :  { %2511 = vmatpush3.bf16.msra.mxu1 %v2820_v21  ;;  %2352 = vmatprep.mubr.msk.f32.mxu1 %vm2700_vm1, %v2698_v3 }
 0xb1a   :  { %2512 = vmatprep.subr.bf16.mxu1 %v2699_v12 }
 0xb1d   :  { %2514 = vmatpush3.bf16.msra.mxu1 %v2830_v24 }
 0xb1e   :  { %2521 = vmatprep.subr.bf16.mxu1 %v2699_v12 }
 0xbe3   :  { %v1081_v57 = vpop.f32.mrb[12].mxu0 }
 0xbe4   :  { %v1082_v58 = vadd.f32 %v1081_v57, %v169_v55  ;;  %v2321_v60 = vpop.f32.mrb[13].mxu0 }
 0xbe6   :  { %2634 = vtanh.f32 %v1082_v58  ;;  %v2088_v4 = vmul.f32 -1.442695, %v1082_v58 }
 0xbeb   :  { %v1157_v56 = vpop.f32.mrb[20].mxu1 }
 0xbec   :  { %v1158_v63 = vadd.f32 %v1157_v56, %v165_v61  ;;  %v2332_v0 = vpop.f32.mrb[21].mxu1 }
 0xbee   :  { %2636 = vtanh.f32 %v1158_v63  ;;  %v2089_v26 = vmul.f32 -1.442695, %v1158_v63 }
 0xbef   :  { %2638 = vpow2.f32 %v2088_v4 }
 0xbf0   :  { %v2635_v1 = vpop.eup %2634  ;;  %2640 = vpow2.f32 %v2089_v26 }
 0xbf1   :  { %1170 = vrot.lane.b32.xlu1 %v2635_v1, %s2701_s4 }
 0xbf8   :  { %v2637_v2 = vpop.eup %2636 }
 0xbf9   :  { %1194 = vrot.lane.b32.xlu0 %v2637_v2, %s2701_s4  ;;  %v2639_v5 = vpop.eup %2638 }
 0xbfa   :  { %v1164_v13 = vadd.f32 1.0, %v2639_v5  ;;  %v2641_v14 = vpop.eup %2640 }
 0xbfb   :  { %v1188_v15 = vadd.f32 1.0, %v2641_v14 }
 0xbfc   :  { %2642 = vrcp.f32 %v1164_v13 }
 0xbfd   :  { %2644 = vrcp.f32 %v1188_v15 }
 0xc06   :  { %v2643_v8 = vpop.eup %2642 }
 0xc07   :  { %v2645_v7 = vpop.eup %2644  ;;  %v1168_v27 = vmul.f32 %v2643_v8, %v978_v32 }
 0xc08   :  { %v1192_v33 = vmul.f32 %v2645_v7, %v1002_v47 }
 0xc63   :  { %v1171_v17 = vpop.permute.xlu1 %1170 }
 0xc64   :  { %v1173_v22 = vmul.f32 %v2643_v8, %v1171_v17 }
 0xc66   :  { %1175 = vrot.lane.b32.xlu1 %v1173_v22, %s2701_s4 }
 0xc6b   :  { %v1195_v23 = vpop.permute.xlu0 %1194 }
 0xc6c   :  { %v1197_v25 = vmul.f32 %v2645_v7, %v1195_v23 }
 0xc6e   :  { %1199 = vrot.lane.b32.xlu0 %v1197_v25, %s2701_s4 }
 0xcd8   :  { %v1176_v30 = vpop.permute.xlu1 %1175 }
 0xcd9   :  { %v1178_v28 = vadd.f32 %v1176_v30, %v1168_v27 }
 0xcdb   :  { %2646 = vtanh.f32 %v1178_v28 }
 0xce0   :  { %v1200_v34 = vpop.permute.xlu0 %1199 }
 0xce1   :  { %v1202_v39 = vadd.f32 %v1200_v34, %v1192_v33 }
 0xce3   :  { %2648 = vtanh.f32 %v1202_v39 }
 0xce5   :  { %v2647_v40 = vpop.eup %2646 }
 0xce6   :  { %1181 = vrot.lane.b32.xlu1 %v2647_v40, %s2701_s4 }
 0xced   :  { %v2649_v41 = vpop.eup %2648 }
 0xcee   :  { %1205 = vrot.lane.b32.xlu0 %v2649_v41, %s2701_s4 }
 0xd58   :  { %v1182_v42 = vpop.permute.xlu1 %1181 }
 0xd59   :  { %v1184_v43 = vmul.f32 %v2643_v8, %v1182_v42  ;;  %v153_v42 = vadd.f32 %v2908_v20, %v2866_v45 }
 0xd5b   :  { %1211 = vrot.lane.b32.xlu1 %v1184_v43, %s2702_s18 }
 0xd60   :  { %v1206_v44 = vpop.permute.xlu0 %1205 }
 0xd61   :  { %v1208_v46 = vmul.f32 %v2645_v7, %v1206_v44 }
 0xd63   :  { %1287 = vrot.lane.b32.xlu0 %v1208_v46, %s2702_s18 }
 0xdcd   :  { %v3043_v32 = vpop.permute.xlu1 %1211 }
 0xdce   :  { %2342 = vmatmul.mubr.msk.f32.vlgmr.msra.gmra.mrb[14].mxu0 %vm216_vm2, %v3043_v32 }
 0xdcf   :  { %2517 = vmatpush3.bf16.msra.mxu0 %v2771_v10  ;;  %2363 = vmatprep.mubr.msk.f32.mxu0 %vm2700_vm1, %v2698_v3 }
 0xdd0   :  { %2518 = vmatprep.subr.bf16.mxu0 %v2699_v12 }
 0xdd3   :  { %2520 = vmatpush3.bf16.msra.mxu0 %v2791_v16 }
 0xdd4   :  { %2527 = vmatprep.subr.bf16.mxu0 %v2699_v12 }
 0xdd5   :  { %v3053_v47 = vpop.permute.xlu0 %1287 }
 0xdd6   :  { %2353 = vmatmul.mubr.msk.f32.vlgmr.msra.gmra.mrb[22].mxu1 %vm216_vm2, %v3053_v47 }
 0xdd7   :  { %2523 = vmatpush3.bf16.msra.mxu1 %v2820_v21  ;;  %2374 = vmatprep.mubr.msk.f32.mxu1 %vm2700_vm1, %v2698_v3 }
 0xdd8   :  { %2524 = vmatprep.subr.bf16.mxu1 %v2699_v12 }
 0xddb   :  { %2526 = vmatpush3.bf16.msra.mxu1 %v2830_v24 }
 0xddc   :  { %2533 = vmatprep.subr.bf16.mxu1 %v2699_v12 }
 0xea1   :  { %v1281_v36 = vpop.f32.mrb[14].mxu0 }
 0xea2   :  { %v1282_v49 = vadd.f32 %v1281_v36, %v175_v48  ;;  %v2343_v50 = vpop.f32.mrb[15].mxu0 }
 0xea4   :  { %2650 = vtanh.f32 %v1282_v49  ;;  %v2092_v61 = vmul.f32 -1.442695, %v1282_v49 }
 0xea9   :  { %v1357_v53 = vpop.f32.mrb[22].mxu1 }
 0xeaa   :  { %v1358_v55 = vadd.f32 %v1357_v53, %v159_v52  ;;  %v2354_v57 = vpop.f32.mrb[23].mxu1 }
 0xeac   :  { %2652 = vtanh.f32 %v1358_v55  ;;  %v2093_v31 = vmul.f32 -1.442695, %v1358_v55 }
 0xead   :  { %2654 = vpow2.f32 %v2092_v61 }
 0xeae   :  { %v2651_v58 = vpop.eup %2650  ;;  %2656 = vpow2.f32 %v2093_v31 }
 0xeaf   :  { %1370 = vrot.lane.b32.xlu1 %v2651_v58, %s2701_s4 }
 0xeb6   :  { %v2653_v60 = vpop.eup %2652 }
 0xeb7   :  { %1394 = vrot.lane.b32.xlu0 %v2653_v60, %s2701_s4  ;;  %v2655_v56 = vpop.eup %2654 }
 0xeb8   :  { %v1364_v63 = vadd.f32 1.0, %v2655_v56  ;;  %v2657_v0 = vpop.eup %2656 }
 0xeb9   :  { %v1388_v1 = vadd.f32 1.0, %v2657_v0 }
 0xeba   :  { %2658 = vrcp.f32 %v1364_v63 }
 0xebb   :  { %2660 = vrcp.f32 %v1388_v1 }
 0xec4   :  { %v2659_v6 = vpop.eup %2658 }
 0xec5   :  { %v2661_v26 = vpop.eup %2660  ;;  %v1368_v14 = vmul.f32 %v2659_v6, %v1178_v28 }
 0xec6   :  { %v1392_v17 = vmul.f32 %v2661_v26, %v1202_v39 }
 0xf21   :  { %v1371_v2 = vpop.permute.xlu1 %1370 }
 0xf22   :  { %v1373_v4 = vmul.f32 %v2659_v6, %v1371_v2 }
 0xf24   :  { %1375 = vrot.lane.b32.xlu1 %v1373_v4, %s2701_s4 }
 0xf29   :  { %v1395_v5 = vpop.permute.xlu0 %1394 }
 0xf2a   :  { %v1397_v13 = vmul.f32 %v2661_v26, %v1395_v5 }
 0xf2c   :  { %1399 = vrot.lane.b32.xlu0 %v1397_v13, %s2701_s4 }
 0xf96   :  { %v1376_v15 = vpop.permute.xlu1 %1375 }
 0xf97   :  { %v1378_v8 = vadd.f32 %v1376_v15, %v1368_v14  ;;  %v187_v14 = vadd.f32 %v2863_v38, %v2861_v37 }
 0xf99   :  { %2662 = vtanh.f32 %v1378_v8 }
 0xf9e   :  { %v1400_v22 = vpop.permute.xlu0 %1399 }
 0xf9f   :  { %v1402_v7 = vadd.f32 %v1400_v22, %v1392_v17  ;;  %v147_v22 = vadd.f32 %v2848_v29, %v2866_v45 }
 0xfa1   :  { %2664 = vtanh.f32 %v1402_v7 }
 0xfa3   :  { %v2663_v23 = vpop.eup %2662 }
 0xfa4   :  { %1381 = vrot.lane.b32.xlu1 %v2663_v23, %s2701_s4 }
 0xfab   :  { %v2665_v25 = vpop.eup %2664 }
 0xfac   :  { %1405 = vrot.lane.b32.xlu0 %v2665_v25, %s2701_s4 }
0x1016   :  { %v1382_v27 = vpop.permute.xlu1 %1381 }
0x1017   :  { %v1384_v30 = vmul.f32 %v2659_v6, %v1382_v27 }
0x1019   :  { %1411 = vrot.lane.b32.xlu1 %v1384_v30, %s2702_s18 }
0x101e   :  { %v1406_v33 = vpop.permute.xlu0 %1405 }
0x101f   :  { %v1408_v34 = vmul.f32 %v2661_v26, %v1406_v33 }
0x1021   :  { %1487 = vrot.lane.b32.xlu0 %v1408_v34, %s2702_s18 }
0x108b   :  { %v3075_v28 = vpop.permute.xlu1 %1411 }
0x108c   :  { %2364 = vmatmul.mubr.msk.f32.vlgmr.msra.gmra.mrb[16].mxu0 %vm216_vm2, %v3075_v28 }
0x108d   :  { %2529 = vmatpush3.bf16.msra.mxu0 %v2771_v10  ;;  %2385 = vmatprep.mubr.msk.f32.mxu0 %vm2700_vm1, %v2698_v3  ;;  %v181_v10 = vadd.f32 %v2857_v35, %v2861_v37 }
0x108e   :  { %2530 = vmatprep.subr.bf16.mxu0 %v2699_v12 }
0x1091   :  { %2532 = vmatpush3.bf16.msra.mxu0 %v2791_v16 }
0x1093   :  { %v3084_v39 = vpop.permute.xlu0 %1487 }
0x1094   :  { %2375 = vmatmul.mubr.msk.f32.vlgmr.msra.gmra.mrb[24].mxu1 %vm216_vm2, %v3084_v39 }
0x1095   :  { %2535 = vmatpush3.bf16.msra.mxu1 %v2820_v21  ;;  %2396 = vmatprep.mubr.msk.f32.mxu1 %vm2700_vm1, %v2698_v3 }
0x1096   :  { %2536 = vmatprep.subr.bf16.mxu1 %v2699_v12 }
0x1099   :  { %2538 = vmatpush3.bf16.msra.mxu1 %v2830_v24 }
0x115f   :  { %v1481_v40 = vpop.f32.mrb[16].mxu0 }
0x1160   :  { %v1482_v41 = vadd.f32 %v1481_v40, %v181_v10  ;;  %v2365_v16 = vpop.f32.mrb[17].mxu0 }
0x1162   :  { %2666 = vtanh.f32 %v1482_v41  ;;  %v2096_v12 = vmul.f32 -1.442695, %v1482_v41 }
0x1167   :  { %v1557_v43 = vpop.f32.mrb[24].mxu1 }
0x1168   :  { %v1558_v44 = vadd.f32 %v1557_v43, %v153_v42  ;;  %v2376_v21 = vpop.f32.mrb[25].mxu1 }
0x116a   :  { %2668 = vtanh.f32 %v1558_v44  ;;  %v2097_v24 = vmul.f32 -1.442695, %v1558_v44 }
0x116b   :  { %2670 = vpow2.f32 %v2096_v12 }
0x116c   :  { %v2667_v46 = vpop.eup %2666  ;;  %2672 = vpow2.f32 %v2097_v24 }
0x116d   :  { %1570 = vrot.lane.b32.xlu1 %v2667_v46, %s2701_s4 }
0x1174   :  { %v2669_v3 = vpop.eup %2668 }
0x1175   :  { %1594 = vrot.lane.b32.xlu0 %v2669_v3, %s2701_s4  ;;  %v2671_v35 = vpop.eup %2670 }
0x1176   :  { %v1564_v48 = vadd.f32 1.0, %v2671_v35  ;;  %v2673_v36 = vpop.eup %2672 }
0x1177   :  { %v1588_v49 = vadd.f32 1.0, %v2673_v36  ;;  %v1813_v36 = vld [vmem:[%s3211_s6] sm:$0xff] }
0x1178   :  { %2674 = vrcp.f32 %v1564_v48 }
0x1179   :  { %2676 = vrcp.f32 %v1588_v49  ;;  %v1814_v49 = vld [vmem:[%s3211_s6 + $0x8] sm:$0xff] }
0x1182   :  { %v2675_v20 = vpop.eup %2674 }
0x1183   :  { %v2677_v53 = vpop.eup %2676  ;;  %v1568_v58 = vmul.f32 %v2675_v20, %v1378_v8 }
0x1184   :  { %v1592_v31 = vmul.f32 %v2677_v53, %v1402_v7 }
0x11df   :  { %v1571_v50 = vpop.permute.xlu1 %1570 }
0x11e0   :  { %v1573_v52 = vmul.f32 %v2675_v20, %v1571_v50  ;;  %v1815_v50 = vld [vmem:[%s3211_s6 + $0x10] sm:$0xff] }
0x11e2   :  { %1575 = vrot.lane.b32.xlu1 %v1573_v52, %s2701_s4  ;;  %v1816_v52 = vld [vmem:[%s3211_s6 + $0x18] sm:$0xff] }
0x11e7   :  { %v1595_v55 = vpop.permute.xlu0 %1594 }
0x11e8   :  { %v1597_v57 = vmul.f32 %v2677_v53, %v1595_v55 }
0x11ea   :  { %1599 = vrot.lane.b32.xlu0 %v1597_v57, %s2701_s4  ;;  %v1809_v57 = vld [vmem:[%s3212_s5] sm:$0xff] }
0x1254   :  { %v1576_v60 = vpop.permute.xlu1 %1575 }
0x1255   :  { %v1578_v61 = vadd.f32 %v1576_v60, %v1568_v58  ;;  %v1810_v58 = vld [vmem:[%s3212_s5 + $0x8] sm:$0xff] }
0x1257   :  { %2678 = vtanh.f32 %v1578_v61 }
0x125c   :  { %v1600_v56 = vpop.permute.xlu0 %1599 }
0x125d   :  { %v1602_v63 = vadd.f32 %v1600_v56, %v1592_v31 }
0x125f   :  { %2680 = vtanh.f32 %v1602_v63 }
0x1261   :  { %v2679_v0 = vpop.eup %2678 }
0x1262   :  { %1581 = vrot.lane.b32.xlu1 %v2679_v0, %s2701_s4  ;;  %v1812_v0 = vld [vmem:[%s3212_s5 + $0x18] sm:$0xff] }
0x1269   :  { %v2681_v1 = vpop.eup %2680 }
0x126a   :  { %1605 = vrot.lane.b32.xlu0 %v2681_v1, %s2701_s4 }
0x12d4   :  { %v1582_v6 = vpop.permute.xlu1 %1581 }
0x12d5   :  { %v1584_v2 = vmul.f32 %v2675_v20, %v1582_v6  ;;  %v2539_v20 = vpack.c.bf16 %v1814_v49, %v1813_v36 }
0x12d7   :  { %1611 = vrot.lane.b32.xlu1 %v1584_v2, %s2702_s18  ;;  %2540 = vmatprep.subr.bf16.mxu0 %v2539_v20 }
0x12dc   :  { %v1606_v4 = vpop.permute.xlu0 %1605 }
0x12dd   :  { %v1608_v26 = vmul.f32 %v2677_v53, %v1606_v4  ;;  %v2543_v53 = vpack.c.bf16 %v1816_v52, %v1815_v50 }
0x12df   :  { %1687 = vrot.lane.b32.xlu0 %v1608_v26, %s2702_s18 }
0x1349   :  { %v3105_v5 = vpop.permute.xlu1 %1611 }
0x134a   :  { %2386 = vmatmul.mubr.msk.f32.vlgmr.msra.gmra.mrb[18].mxu0 %vm216_vm2, %v3105_v5 }
0x134b   :  { %2542 = vmatpush3.bf16.msra.mxu0 %v2539_v20 }
0x134c   :  { %2544 = vmatprep.subr.bf16.mxu0 %v2543_v53 }
0x134f   :  { %2546 = vmatpush3.bf16.msra.mxu0 %v2543_v53 }
0x1351   :  { %v3109_v13 = vpop.permute.xlu0 %1687 }
0x1352   :  { %2397 = vmatmul.mubr.msk.f32.vlgmr.msra.gmra.mrb[26].mxu1 %vm216_vm2, %v3109_v13 }
0x141d   :  { %v1681_v15 = vpop.f32.mrb[18].mxu0 }
0x141e   :  { %v1682_v8 = vadd.f32 %v1681_v15, %v187_v14  ;;  %v2387_v17 = vpop.f32.mrb[19].mxu0 }
0x1420   :  { %2682 = vtanh.f32 %v1682_v8  ;;  %v2100_v33 = vmul.f32 -1.442695, %v1682_v8 }
0x1425   :  { %v1757_v7 = vpop.f32.mrb[26].mxu1 }
0x1426   :  { %v1758_v23 = vadd.f32 %v1757_v7, %v147_v22  ;;  %v2398_v25 = vpop.f32.mrb[27].mxu1 }
0x1428   :  { %2684 = vtanh.f32 %v1758_v23  ;;  %v2101_v37 = vmul.f32 -1.442695, %v1758_v23 }
0x1429   :  { %2686 = vpow2.f32 %v2100_v33 }
0x142a   :  { %v2683_v27 = vpop.eup %2682  ;;  %2688 = vpow2.f32 %v2101_v37 }
0x142b   :  { %1770 = vrot.lane.b32.xlu1 %v2683_v27, %s2701_s4 }
0x1432   :  { %v2685_v30 = vpop.eup %2684 }
0x1433   :  { %1794 = vrot.lane.b32.xlu0 %v2685_v30, %s2701_s4  ;;  %v2687_v38 = vpop.eup %2686 }
0x1434   :  { %v1764_v34 = vadd.f32 1.0, %v2687_v38  ;;  %v2689_v10 = vpop.eup %2688 }
0x1435   :  { %v1788_v40 = vadd.f32 1.0, %v2689_v10 }
0x1436   :  { %2690 = vrcp.f32 %v1764_v34 }
0x1437   :  { %2692 = vrcp.f32 %v1788_v40 }
0x1440   :  { %v2691_v29 = vpop.eup %2690 }
0x1441   :  { %v2693_v16 = vpop.eup %2692  ;;  %v1768_v44 = vmul.f32 %v2691_v29, %v1578_v61  ;;  %v2547_v61 = vpack.c.bf16 %v1810_v58, %v1809_v57 }
0x1442   :  { %v1792_v3 = vmul.f32 %v2693_v16, %v1602_v63  ;;  %v1811_v63 = vld [vmem:[%s3212_s5 + $0x10] sm:$0xff] }
0x1443   :  { %2548 = vmatprep.subr.bf16.mxu0 %v2547_v61  ;;  %v2551_v6 = vpack.c.bf16 %v1812_v0, %v1811_v63 }
0x149d   :  { %v1771_v45 = vpop.permute.xlu1 %1770 }
0x149e   :  { %v1773_v41 = vmul.f32 %v2691_v29, %v1771_v45 }
0x14a0   :  { %1775 = vrot.lane.b32.xlu1 %v1773_v41, %s2701_s4 }
0x14a5   :  { %v1795_v42 = vpop.permute.xlu0 %1794 }
0x14a6   :  { %v1797_v43 = vmul.f32 %v2693_v16, %v1795_v42 }
0x14a8   :  { %1799 = vrot.lane.b32.xlu0 %v1797_v43, %s2701_s4 }
0x1512   :  { %v1776_v21 = vpop.permute.xlu1 %1775 }
0x1513   :  { %v1778_v46 = vadd.f32 %v1776_v21, %v1768_v44 }
0x1515   :  { %2694 = vtanh.f32 %v1778_v46 }
0x151a   :  { %v1800_v12 = vpop.permute.xlu0 %1799 }
0x151b   :  { %v1802_v24 = vadd.f32 %v1800_v12, %v1792_v3 }
0x151d   :  { %2696 = vtanh.f32 %v1802_v24 }
0x151f   :  { %v2695_v35 = vpop.eup %2694 }
0x1520   :  { %1781 = vrot.lane.b32.xlu1 %v2695_v35, %s2701_s4 }
0x1527   :  { %v2697_v48 = vpop.eup %2696 }
0x1528   :  { %1805 = vrot.lane.b32.xlu0 %v2697_v48, %s2701_s4 }
0x1592   :  { %v1782_v55 = vpop.permute.xlu1 %1781 }
0x1593   :  { %v1784_v60 = vmul.f32 %v2691_v29, %v1782_v55 }
0x1595   :  { %1928 = vrot.lane.b32.xlu1 %v1784_v60, %s2702_s18 }
0x159a   :  { %v1806_v31 = vpop.permute.xlu0 %1805 }
0x159b   :  { %v1808_v56 = vmul.f32 %v2693_v16, %v1806_v31 }
0x159d   :  { %1818 = vrot.lane.b32.xlu0 %v1808_v56, %s2702_s18 }
0x160f   :  { %v1819_v1 = vpop.permute.xlu0 %1818 }
0x1610   :  { %2407 = vmatprep.mubr.msk.f32.mxu0 %vm216_vm2, %v1819_v1 }
0x1611   :  { %2408 = vmatmul.mubr.msk.f32.vlgmr.msra.gmra.mrb[20].mxu0 %vm216_vm2, %v3109_v13 }
0x1612   :  { %2410 = vmatprep.mubr.msk.f32.mxu0 %vm216_vm2, %v3084_v39  ;;  %2550 = vmatpush3.bf16.msra.mxu0 %v2547_v61 }
0x1613   :  { %2552 = vmatprep.subr.bf16.mxu0 %v2551_v6 }
0x1615   :  { %2411 = vmatmul.mubr.msk.f32.gmra.mrb[22].mxu0 %vm216_vm2, %v3053_v47 }
0x1616   :  { %2413 = vmatprep.mubr.msk.f32.mxu0 %vm216_vm2, %v3021_v54  ;;  %2554 = vmatpush3.bf16.msra.mxu0 %v2551_v6 }
0x1619   :  { %2414 = vmatmul.mubr.msk.f32.gmra.mrb[24].mxu0 %vm216_vm2, %v2989_v59 }
0x161a   :  { %2416 = vmatprep.mubr.msk.f32.mxu0 %vm216_vm2, %v2956_v11 }
0x161d   :  { %2417 = vmatmul.mubr.msk.f32.gmra.mrb[26].mxu0 %vm216_vm2, %v2898_v19  ;;  %v1929_v19 = vpop.permute.xlu1 %1928 }
0x161e   :  { %2427 = vmatprep.mubr.msk.f32.mxu0 %vm216_vm2, %v2888_v18  ;;  %v2118_v18 = vld [vmem:[%s3213_s7] ss:$0 sm:$0xff] }
0x1621   :  { %2428 = vmatmul.mubr.msk.f32.vlgmr.msra.gmra.mrb[20].mxu0 %vm216_vm2, %v2946_v9 }
0x1622   :  { %2430 = vmatprep.mubr.msk.f32.mxu0 %vm216_vm2, %v2979_v62 }
0x1625   :  { %2431 = vmatmul.mubr.msk.f32.gmra.mrb[22].mxu0 %vm216_vm2, %v3011_v51 }
0x1626   :  { %2433 = vmatprep.mubr.msk.f32.mxu0 %vm216_vm2, %v3043_v32 }
0x1629   :  { %2434 = vmatmul.mubr.msk.f32.gmra.mrb[24].mxu0 %vm216_vm2, %v3075_v28 }
0x162a   :  { %2436 = vmatprep.mubr.msk.f32.mxu0 %vm216_vm2, %v3105_v5 }
0x162d   :  { %2437 = vmatmul.mubr.msk.f32.gmra.mrb[26].mxu0 %vm216_vm2, %v1929_v19 }
0x16f4   :  { %v2429_v9 = vpop.f32.mrb[20].mxu0 }
0x16f5   :  { %v2045_v11 = vadd.f32 %v2429_v9, %v2118_v18  ;;  %v1998_v62 = vpop.f32.mrb[21].mxu0 }
0x16f6   :  { %v2044_v59 = vadd.f32 %v2118_v18, %v1998_v62 }
0x16f7   :  { %2053 = vst [vmem:[%s3214_s8 + $0x8] sm:$0xff] %v2045_v11 }
0x16f8   :  { %2052 = vst [vmem:[%s3214_s8] sm:$0xff] %v2044_v59  ;;  %v2432_v51 = vpop.f32.mrb[22].mxu0 }
0x16f9   :  { %v2047_v54 = vadd.f32 %v2432_v51, %v2118_v18  ;;  %v2008_v32 = vpop.f32.mrb[23].mxu0 }
0x16fa   :  { %v2046_v47 = vadd.f32 %v2118_v18, %v2008_v32 }
0x16fb   :  { %2055 = vst [vmem:[%s3214_s8 + $0x18] sm:$0xff] %v2047_v54 }
0x16fc   :  { %2054 = vst [vmem:[%s3214_s8 + $0x10] sm:$0xff] %v2046_v47  ;;  %v2435_v28 = vpop.f32.mrb[24].mxu0 }
0x16fd   :  { %v2049_v39 = vadd.f32 %v2435_v28, %v2118_v18  ;;  %v2018_v2 = vpop.f32.mrb[25].mxu0 }
0x16fe   :  { %v2048_v4 = vadd.f32 %v2118_v18, %v2018_v2 }
0x16ff   :  { %2057 = vst [vmem:[%s3214_s8 + $0x28] sm:$0xff] %v2049_v39 }
0x1700   :  { %2056 = vst [vmem:[%s3214_s8 + $0x20] sm:$0xff] %v2048_v4  ;;  %v2438_v26 = vpop.f32.mrb[26].mxu0 }
0x1701   :  { %v2051_v5 = vadd.f32 %v2438_v26, %v2118_v18  ;;  %v2028_v13 = vpop.f32.mrb[27].mxu0 }
0x1702   :  { %v2050_v14 = vadd.f32 %v2118_v18, %v2028_v13 }
0x1703   :  { %2059 = vst [vmem:[%s3214_s8 + $0x38] sm:$0xff] %v2051_v5 }
0x1704   :  { %2058 = vst [vmem:[%s3214_s8 + $0x30] sm:$0xff] %v2050_v14 }

</bundles_post_ra>
